<compile_context>
chip_gen: v7x
topology: tpu7x:2x2x1
jax: 0.10.0
libtpu: 0.0.40
codegen_flags: <defaults>
</compile_context>

<pallas_src>
import functools

import jax
import jax.numpy as jnp
import numpy as np
from jax.experimental import pallas as pl
from jax.experimental.pallas import tpu as pltpu


def _make_lstm_kernel(num_layers, seq, B_pad, H, O_pad, matmul_dtype):
    """Builds a kernel with signature:
       kernel(x_flat, (w_ih, w_hh, b) * num_layers, w_fc, b_fc,   # inputs
              y, h_n, c_n,                                        # outputs
              hseq)                                               # VMEM scratch
    Shapes:
       x_flat : (seq*B_pad, I)   matmul_dtype, time-major, batch-padded
       w_ih   : (in_dim, 4H)     w_hh : (H, 4H)    (matmul_dtype, g-cols x2)
       b      : (1, 4H) f32      (g-cols x2)
       w_fc   : (H, O_pad) matmul_dtype            b_fc : (1, O_pad) f32
       y      : (seq*B_pad, O_pad) f32
       h_n/c_n: (num_layers, B_pad, H) f32
       hseq   : (seq*B_pad, H) f32  — per-layer output staging
    """

    def kernel(*refs):
        x_ref = refs[0]
        pos = 1
        layer_w = []
        for _ in range(num_layers):
            layer_w.append((refs[pos], refs[pos + 1], refs[pos + 2]))
            pos += 3
        wfc_ref, bfc_ref = refs[pos], refs[pos + 1]
        pos += 2
        y_ref, hn_ref, cn_ref = refs[pos], refs[pos + 1], refs[pos + 2]
        hseq_ref = refs[pos + 3]                   # VMEM scratch

        for l in range(num_layers):
            w_ih_ref, w_hh_ref, b_ref = layer_w[l]

            # Layer input: x for layer 0, otherwise the previous layer's
            # per-step outputs staged in the VMEM scratch (no concatenate,
            # no growing vreg live set).
            if l == 0:
                layer_in = x_ref[...]                       # matmul_dtype
            else:
                layer_in = hseq_ref[...].astype(matmul_dtype)

            # (1) Hoisted input projection + bias: one bulk matmul per layer,
            #     outside the recurrence.  The g-gate columns of the weights
            #     and bias are pre-scaled by 2 (wrapper) so the cell candidate
            #     can be recovered from the full-width sigmoid below.
            gx = (jnp.dot(layer_in, w_ih_ref[...],
                          preferred_element_type=jnp.float32)
                  + b_ref[...])                    # (seq*B_pad, 4H) f32

            w_hh = w_hh_ref[...]                   # (H, 4H) — tiny, load once
            # TODO(synk): hold w_hh in the MXU weight registers for the whole
            # time loop via pltpu.matmul_push_rhs/matmul_acc_lhs/matmul_pop.
            h = jnp.zeros((B_pad, H), jnp.float32)
            c = jnp.zeros((B_pad, H), jnp.float32)

            # (2) Statically unrolled recurrence; h/c are register-resident,
            #     only h @ w_hh is on the serial critical path.  Per-step
            #     outputs go straight to VMEM (store slot has slack).
            for t in range(seq):
                gates = gx[t * B_pad:(t + 1) * B_pad, :] + jnp.dot(
                    h.astype(matmul_dtype), w_hh,
                    preferred_element_type=jnp.float32)       # (B_pad, 4H)
                # PyTorch gate order: i, f, g, o.  One full-width sigmoid
                # (single EUP pass) covers i/f/o and — via the pre-scaled g
                # columns — the cell candidate: tanh(x) = 2*sigmoid(2x) - 1.
                sig = jax.nn.sigmoid(gates)
                i_g = sig[:, 0:H]
                f_g = sig[:, H:2 * H]
                g_g = 2.0 * sig[:, 2 * H:3 * H] - 1.0
                o_g = sig[:, 3 * H:4 * H]
                c = f_g * c + i_g * g_g
                h = o_g * jnp.tanh(c)
                hseq_ref[t * B_pad:(t + 1) * B_pad, :] = h

            hn_ref[l] = h
            cn_ref[l] = c

        # (3) Bulk ReLU + fully-connected head over all (seq*B_pad) rows;
        #     output lanes padded to 128 so the store is lane-dense.
        h_relu = jnp.maximum(hseq_ref[...], 0.0).astype(matmul_dtype)
        y_ref[...] = (jnp.dot(h_relu, wfc_ref[...],
                              preferred_element_type=jnp.float32)
                      + bfc_ref[...])

    return kernel


def init_params(key, input_size, hidden_size, output_size, num_layers):
    """Deterministic parameter init matching PyTorch shapes (weights are
    pre-transposed to (in, 4H)/(H, 4H)/(H, O) and the two LSTM biases are
    summed, which is mathematically identical)."""
    params = {}
    k = 1.0 / np.sqrt(hidden_size)
    for l in range(num_layers):
        in_dim = input_size if l == 0 else hidden_size
        key, k1, k2, k3, k4 = jax.random.split(key, 5)
        w_ih = jax.random.uniform(k1, (4 * hidden_size, in_dim),
                                  jnp.float32, -k, k)
        w_hh = jax.random.uniform(k2, (4 * hidden_size, hidden_size),
                                  jnp.float32, -k, k)
        b_ih = jax.random.uniform(k3, (4 * hidden_size,), jnp.float32, -k, k)
        b_hh = jax.random.uniform(k4, (4 * hidden_size,), jnp.float32, -k, k)
        params[f"w_ih_{l}"] = w_ih.T                       # (in_dim, 4H)
        params[f"w_hh_{l}"] = w_hh.T                       # (H, 4H)
        params[f"b_{l}"] = (b_ih + b_hh).reshape(1, -1)    # (1, 4H)
    key, k1, k2 = jax.random.split(key, 3)
    kf = 1.0 / np.sqrt(hidden_size)
    w_fc = jax.random.uniform(k1, (output_size, hidden_size),
                              jnp.float32, -kf, kf)
    b_fc = jax.random.uniform(k2, (output_size,), jnp.float32, -kf, kf)
    params["w_fc"] = w_fc.T                                # (H, O)
    params["b_fc"] = b_fc.reshape(1, -1)                   # (1, O)
    return params


@functools.partial(jax.jit, static_argnames=("num_layers", "matmul_dtype"))
def lstm_forward(x, params, num_layers, hc=None, matmul_dtype=jnp.bfloat16):
    """x: (batch, seq, input_size).  Returns (y, (h_n, c_n)).
    `hc` is accepted and ignored, mirroring the PyTorch module's forward().
    Matmul operands (only) are fed to the MXU in `matmul_dtype`; all gate /
    cell element-wise math stays f32."""
    del hc
    x = x.astype(jnp.float32)
    B, seq, I = x.shape
    H = params["w_hh_0"].shape[0]
    O = params["w_fc"].shape[1]

    B_pad = ((B + 7) // 8) * 8            # sublane-align the batch (f32 -> 8)
    O_pad = ((O + 127) // 128) * 128      # lane-dense FC output store

    # Time-major, batch-padded, flattened to (seq*B_pad, I) rows.
    x_tm = jnp.transpose(x, (1, 0, 2))                       # (seq, B, I)
    x_tm = jnp.pad(x_tm, ((0, 0), (0, B_pad - B), (0, 0)))
    x_flat = x_tm.reshape(seq * B_pad, I).astype(matmul_dtype)

    # One-time tiny weight-column transform (outside the kernel): doubling
    # the g-gate columns lets the kernel fold tanh(pre_g) into the full-width
    # sigmoid it already computes (tanh(x) = 2*sigmoid(2x) - 1), removing one
    # dependent EUP pass per recurrence step.
    g_scale = jnp.ones((1, 4 * H), jnp.float32).at[:, 2 * H:3 * H].set(2.0)

    inputs = [x_flat]
    for l in range(num_layers):
        inputs.append((params[f"w_ih_{l}"] * g_scale).astype(matmul_dtype))
        inputs.append((params[f"w_hh_{l}"] * g_scale).astype(matmul_dtype))
        inputs.append(params[f"b_{l}"] * g_scale)            # stays f32
    inputs.append(jnp.pad(params["w_fc"],
                          ((0, 0), (0, O_pad - O))).astype(matmul_dtype))
    inputs.append(jnp.pad(params["b_fc"], ((0, 0), (0, O_pad - O))))

    out_shapes = (
        jax.ShapeDtypeStruct((seq * B_pad, O_pad), jnp.float32),    # y (flat)
        jax.ShapeDtypeStruct((num_layers, B_pad, H), jnp.float32),  # h_n
        jax.ShapeDtypeStruct((num_layers, B_pad, H), jnp.float32),  # c_n
    )
    vmem_spec = pl.BlockSpec(memory_space=pltpu.MemorySpace.VMEM)

    y_flat, h_n, c_n = pl.pallas_call(
        _make_lstm_kernel(num_layers, seq, B_pad, H, O_pad, matmul_dtype),
        out_shape=out_shapes,
        in_specs=[vmem_spec] * len(inputs),
        out_specs=(vmem_spec, vmem_spec, vmem_spec),
        scratch_shapes=[pltpu.VMEM((seq * B_pad, H), jnp.float32)],
        compiler_params=pltpu.CompilerParams(
            vmem_limit_bytes=32 * 1024 * 1024),
    )(*inputs)

    y = y_flat.reshape(seq, B_pad, O_pad)[:, :B, :O]          # (seq, B, O)
    return jnp.transpose(y, (1, 0, 2)), (h_n[:, :B, :], c_n[:, :B, :])


def _reference_forward(x, params, num_layers, matmul_dtype=None):
    """Pure-JAX reference of the module math.  If `matmul_dtype` is given, the
    matmul operands are cast to it (matching the kernel's MXU precision); all
    other math stays f32."""
    def mm(a, b):
        if matmul_dtype is not None:
            a, b = a.astype(matmul_dtype), b.astype(matmul_dtype)
        return jnp.dot(a, b, preferred_element_type=jnp.float32)

    x = x.astype(jnp.float32)
    B, seq, _ = x.shape
    H = params["w_hh_0"].shape[0]
    inp = x
    hs, cs = [], []
    for l in range(num_layers):
        w_ih = params[f"w_ih_{l}"]
        w_hh = params[f"w_hh_{l}"]
        b = params[f"b_{l}"]
        h = jnp.zeros((B, H), jnp.float32)
        c = jnp.zeros((B, H), jnp.float32)
        outs = []
        for t in range(seq):
            g = mm(inp[:, t, :], w_ih) + mm(h, w_hh) + b
            i_g = jax.nn.sigmoid(g[:, 0:H])
            f_g = jax.nn.sigmoid(g[:, H:2 * H])
            g_g = jnp.tanh(g[:, 2 * H:3 * H])
            o_g = jax.nn.sigmoid(g[:, 3 * H:4 * H])
            c = f_g * c + i_g * g_g
            h = o_g * jnp.tanh(c)
            outs.append(h)
        inp = jnp.stack(outs, axis=1)
        hs.append(h)
        cs.append(c)
    y = mm(jnp.maximum(inp, 0.0), params["w_fc"]) + params["b_fc"]
    return y, (jnp.stack(hs, 0), jnp.stack(cs, 0))


if __name__ == "__main__":
    # Small shapes consistent with the module's forward pass.
    batch_size, seq_len = 2, 8
    input_size, hidden_size, output_size, num_layers = 16, 32, 16, 2

    key = jax.random.PRNGKey(0)
    key, pkey, xkey = jax.random.split(key, 3)
    params = init_params(pkey, input_size, hidden_size, output_size, num_layers)
    x = jax.random.normal(xkey, (batch_size, seq_len, input_size), jnp.float32)

    # hc argument exists for API parity but is unused (as in the PyTorch code).
    hc = (jnp.zeros((num_layers, batch_size, hidden_size), jnp.float32),
          jnp.zeros((num_layers, batch_size, hidden_size), jnp.float32))

    y, (h_n, c_n) = lstm_forward(x, params, num_layers=num_layers, hc=hc)
    jax.block_until_ready((y, h_n, c_n))

    # (a) Matched-precision reference (bf16 MXU operands, f32 elsewhere):
    #     tight check of the kernel's math (gate order, biases, tanh fold).
    y_m, (h_m, c_m) = _reference_forward(x, params, num_layers,
                                         matmul_dtype=jnp.bfloat16)
    np.testing.assert_allclose(np.asarray(y), np.asarray(y_m),
                               rtol=5e-3, atol=5e-3)
    np.testing.assert_allclose(np.asarray(h_n), np.asarray(h_m),
                               rtol=5e-3, atol=5e-3)
    np.testing.assert_allclose(np.asarray(c_n), np.asarray(c_m),
                               rtol=5e-3, atol=5e-3)

    # (b) Exact f32 module math: loose sanity bound on the bf16 MXU inputs
    #     (review: expect ~1e-3 drift vs the f32 reference).
    y_f, (h_f, c_f) = _reference_forward(x, params, num_layers)
    np.testing.assert_allclose(np.asarray(y), np.asarray(y_f),
                               rtol=5e-2, atol=5e-2)
    np.testing.assert_allclose(np.asarray(h_n), np.asarray(h_f),
                               rtol=5e-2, atol=5e-2)
    np.testing.assert_allclose(np.asarray(c_n), np.asarray(c_f),
                               rtol=5e-2, atol=5e-2)

    print("KERNEL_OK")
</pallas_src>

<mosaic_0001>
module attributes {stable_mosaic.version = 11 : i64} {
  func.func @kernel(%arg0: memref<64x16xbf16, #tpu.memory_space<vmem>>, %arg1: memref<16x128xbf16, #tpu.memory_space<vmem>>, %arg2: memref<32x128xbf16, #tpu.memory_space<vmem>>, %arg3: memref<1x128xf32, #tpu.memory_space<vmem>>, %arg4: memref<32x128xbf16, #tpu.memory_space<vmem>>, %arg5: memref<32x128xbf16, #tpu.memory_space<vmem>>, %arg6: memref<1x128xf32, #tpu.memory_space<vmem>>, %arg7: memref<32x128xbf16, #tpu.memory_space<vmem>>, %arg8: memref<1x128xf32, #tpu.memory_space<vmem>>, %arg9: memref<64x128xf32, #tpu.memory_space<vmem>>, %arg10: memref<2x8x32xf32, #tpu.memory_space<vmem>>, %arg11: memref<2x8x32xf32, #tpu.memory_space<vmem>>, %arg12: memref<64x32xf32, #tpu.memory_space<vmem>>) attributes {dimension_semantics = [], scalar_prefetch = 0 : i64, scratch_operands = 1 : i64, tpu.core_type = #tpu.core_type<tc>} {
    %c0 = arith.constant 0 : index
    %c0_0 = arith.constant 0 : index
    %0 = vector.load %arg0[%c0, %c0_0] : memref<64x16xbf16, #tpu.memory_space<vmem>>, vector<64x16xbf16>
    %c0_1 = arith.constant 0 : index
    %c0_2 = arith.constant 0 : index
    %1 = vector.load %arg1[%c0_1, %c0_2] : memref<16x128xbf16, #tpu.memory_space<vmem>>, vector<16x128xbf16>
    %cst = arith.constant dense<0.000000e+00> : vector<64x128xf32>
    %2 = tpu.matmul %0, %1, %cst {dimension_numbers = #tpu.dot_dimension_numbers<[1], [0], [0], [1], [0, 0, 1, 1], [], []>} : vector<64x16xbf16>, vector<16x128xbf16>, vector<64x128xf32> -> vector<64x128xf32>
    %c0_3 = arith.constant 0 : index
    %c0_4 = arith.constant 0 : index
    %3 = vector.load %arg3[%c0_3, %c0_4] : memref<1x128xf32, #tpu.memory_space<vmem>>, vector<1x128xf32>
    %4 = vector.broadcast %3 : vector<1x128xf32> to vector<64x128xf32>
    %5 = arith.addf %2, %4 : vector<64x128xf32>
    %c0_5 = arith.constant 0 : index
    %c0_6 = arith.constant 0 : index
    %6 = vector.load %arg2[%c0_5, %c0_6] : memref<32x128xbf16, #tpu.memory_space<vmem>>, vector<32x128xbf16>
    %cst_7 = arith.constant 0.000000e+00 : f32
    %7 = vector.broadcast %cst_7 : f32 to vector<8x32xf32>
    %cst_8 = arith.constant 0.000000e+00 : f32
    %8 = vector.broadcast %cst_8 : f32 to vector<8x32xf32>
    %9 = vector.extract_strided_slice %5 {offsets = [0, 0], sizes = [8, 128], strides = [1, 1]} : vector<64x128xf32> to vector<8x128xf32>
    %10 = arith.truncf %7 : vector<8x32xf32> to vector<8x32xbf16>
    %cst_9 = arith.constant dense<0.000000e+00> : vector<8x128xf32>
    %11 = tpu.matmul %10, %6, %cst_9 {dimension_numbers = #tpu.dot_dimension_numbers<[1], [0], [0], [1], [0, 0, 1, 1], [], []>} : vector<8x32xbf16>, vector<32x128xbf16>, vector<8x128xf32> -> vector<8x128xf32>
    %12 = arith.addf %9, %11 : vector<8x128xf32>
    %13 = arith.negf %12 : vector<8x128xf32>
    %14 = math.exp %13 : vector<8x128xf32>
    %cst_10 = arith.constant 1.000000e+00 : f32
    %15 = vector.broadcast %cst_10 : f32 to vector<8x128xf32>
    %16 = arith.addf %15, %14 : vector<8x128xf32>
    %17 = arith.divf %15, %16 : vector<8x128xf32>
    %18 = vector.extract_strided_slice %17 {offsets = [0, 0], sizes = [8, 32], strides = [1, 1]} : vector<8x128xf32> to vector<8x32xf32>
    %19 = vector.extract_strided_slice %17 {offsets = [0, 32], sizes = [8, 32], strides = [1, 1]} : vector<8x128xf32> to vector<8x32xf32>
    %20 = vector.extract_strided_slice %17 {offsets = [0, 64], sizes = [8, 32], strides = [1, 1]} : vector<8x128xf32> to vector<8x32xf32>
    %cst_11 = arith.constant 2.000000e+00 : f32
    %21 = vector.broadcast %cst_11 : f32 to vector<8x32xf32>
    %22 = arith.mulf %21, %20 : vector<8x32xf32>
    %cst_12 = arith.constant 1.000000e+00 : f32
    %23 = vector.broadcast %cst_12 : f32 to vector<8x32xf32>
    %24 = arith.subf %22, %23 : vector<8x32xf32>
    %25 = vector.extract_strided_slice %17 {offsets = [0, 96], sizes = [8, 32], strides = [1, 1]} : vector<8x128xf32> to vector<8x32xf32>
    %26 = arith.mulf %19, %8 : vector<8x32xf32>
    %27 = arith.mulf %18, %24 : vector<8x32xf32>
    %28 = arith.addf %26, %27 : vector<8x32xf32>
    %29 = math.tanh %28 : vector<8x32xf32>
    %30 = arith.mulf %25, %29 : vector<8x32xf32>
    %c0_13 = arith.constant 0 : index
    %c0_14 = arith.constant 0 : index
    %31 = vector.load %arg12[%c0_13, %c0_14] : memref<64x32xf32, #tpu.memory_space<vmem>>, vector<8x32xf32>
    tpu.vector_store %arg12[%c0_13, %c0_14], %30 {strides = array<i32>} : memref<64x32xf32, #tpu.memory_space<vmem>>, vector<8x32xf32>,
    %32 = vector.extract_strided_slice %5 {offsets = [8, 0], sizes = [8, 128], strides = [1, 1]} : vector<64x128xf32> to vector<8x128xf32>
    %33 = arith.truncf %30 : vector<8x32xf32> to vector<8x32xbf16>
    %cst_15 = arith.constant dense<0.000000e+00> : vector<8x128xf32>
    %34 = tpu.matmul %33, %6, %cst_15 {dimension_numbers = #tpu.dot_dimension_numbers<[1], [0], [0], [1], [0, 0, 1, 1], [], []>} : vector<8x32xbf16>, vector<32x128xbf16>, vector<8x128xf32> -> vector<8x128xf32>
    %35 = arith.addf %32, %34 : vector<8x128xf32>
    %36 = arith.negf %35 : vector<8x128xf32>
    %37 = math.exp %36 : vector<8x128xf32>
    %cst_16 = arith.constant 1.000000e+00 : f32
    %38 = vector.broadcast %cst_16 : f32 to vector<8x128xf32>
    %39 = arith.addf %38, %37 : vector<8x128xf32>
    %40 = arith.divf %38, %39 : vector<8x128xf32>
    %41 = vector.extract_strided_slice %40 {offsets = [0, 0], sizes = [8, 32], strides = [1, 1]} : vector<8x128xf32> to vector<8x32xf32>
    %42 = vector.extract_strided_slice %40 {offsets = [0, 32], sizes = [8, 32], strides = [1, 1]} : vector<8x128xf32> to vector<8x32xf32>
    %43 = vector.extract_strided_slice %40 {offsets = [0, 64], sizes = [8, 32], strides = [1, 1]} : vector<8x128xf32> to vector<8x32xf32>
    %cst_17 = arith.constant 2.000000e+00 : f32
    %44 = vector.broadcast %cst_17 : f32 to vector<8x32xf32>
    %45 = arith.mulf %44, %43 : vector<8x32xf32>
    %cst_18 = arith.constant 1.000000e+00 : f32
    %46 = vector.broadcast %cst_18 : f32 to vector<8x32xf32>
    %47 = arith.subf %45, %46 : vector<8x32xf32>
    %48 = vector.extract_strided_slice %40 {offsets = [0, 96], sizes = [8, 32], strides = [1, 1]} : vector<8x128xf32> to vector<8x32xf32>
    %49 = arith.mulf %42, %28 : vector<8x32xf32>
    %50 = arith.mulf %41, %47 : vector<8x32xf32>
    %51 = arith.addf %49, %50 : vector<8x32xf32>
    %52 = math.tanh %51 : vector<8x32xf32>
    %53 = arith.mulf %48, %52 : vector<8x32xf32>
    %c8 = arith.constant 8 : index
    %c0_19 = arith.constant 0 : index
    %54 = vector.load %arg12[%c8, %c0_19] : memref<64x32xf32, #tpu.memory_space<vmem>>, vector<8x32xf32>
    tpu.vector_store %arg12[%c8, %c0_19], %53 {strides = array<i32>} : memref<64x32xf32, #tpu.memory_space<vmem>>, vector<8x32xf32>,
    %55 = vector.extract_strided_slice %5 {offsets = [16, 0], sizes = [8, 128], strides = [1, 1]} : vector<64x128xf32> to vector<8x128xf32>
    %56 = arith.truncf %53 : vector<8x32xf32> to vector<8x32xbf16>
    %cst_20 = arith.constant dense<0.000000e+00> : vector<8x128xf32>
    %57 = tpu.matmul %56, %6, %cst_20 {dimension_numbers = #tpu.dot_dimension_numbers<[1], [0], [0], [1], [0, 0, 1, 1], [], []>} : vector<8x32xbf16>, vector<32x128xbf16>, vector<8x128xf32> -> vector<8x128xf32>
    %58 = arith.addf %55, %57 : vector<8x128xf32>
    %59 = arith.negf %58 : vector<8x128xf32>
    %60 = math.exp %59 : vector<8x128xf32>
    %cst_21 = arith.constant 1.000000e+00 : f32
    %61 = vector.broadcast %cst_21 : f32 to vector<8x128xf32>
    %62 = arith.addf %61, %60 : vector<8x128xf32>
    %63 = arith.divf %61, %62 : vector<8x128xf32>
    %64 = vector.extract_strided_slice %63 {offsets = [0, 0], sizes = [8, 32], strides = [1, 1]} : vector<8x128xf32> to vector<8x32xf32>
    %65 = vector.extract_strided_slice %63 {offsets = [0, 32], sizes = [8, 32], strides = [1, 1]} : vector<8x128xf32> to vector<8x32xf32>
    %66 = vector.extract_strided_slice %63 {offsets = [0, 64], sizes = [8, 32], strides = [1, 1]} : vector<8x128xf32> to vector<8x32xf32>
    %cst_22 = arith.constant 2.000000e+00 : f32
    %67 = vector.broadcast %cst_22 : f32 to vector<8x32xf32>
    %68 = arith.mulf %67, %66 : vector<8x32xf32>
    %cst_23 = arith.constant 1.000000e+00 : f32
    %69 = vector.broadcast %cst_23 : f32 to vector<8x32xf32>
    %70 = arith.subf %68, %69 : vector<8x32xf32>
    %71 = vector.extract_strided_slice %63 {offsets = [0, 96], sizes = [8, 32], strides = [1, 1]} : vector<8x128xf32> to vector<8x32xf32>
    %72 = arith.mulf %65, %51 : vector<8x32xf32>
    %73 = arith.mulf %64, %70 : vector<8x32xf32>
    %74 = arith.addf %72, %73 : vector<8x32xf32>
    %75 = math.tanh %74 : vector<8x32xf32>
    %76 = arith.mulf %71, %75 : vector<8x32xf32>
    %c16 = arith.constant 16 : index
    %c0_24 = arith.constant 0 : index
    %77 = vector.load %arg12[%c16, %c0_24] : memref<64x32xf32, #tpu.memory_space<vmem>>, vector<8x32xf32>
    tpu.vector_store %arg12[%c16, %c0_24], %76 {strides = array<i32>} : memref<64x32xf32, #tpu.memory_space<vmem>>, vector<8x32xf32>,
    %78 = vector.extract_strided_slice %5 {offsets = [24, 0], sizes = [8, 128], strides = [1, 1]} : vector<64x128xf32> to vector<8x128xf32>
    %79 = arith.truncf %76 : vector<8x32xf32> to vector<8x32xbf16>
    %cst_25 = arith.constant dense<0.000000e+00> : vector<8x128xf32>
    %80 = tpu.matmul %79, %6, %cst_25 {dimension_numbers = #tpu.dot_dimension_numbers<[1], [0], [0], [1], [0, 0, 1, 1], [], []>} : vector<8x32xbf16>, vector<32x128xbf16>, vector<8x128xf32> -> vector<8x128xf32>
    %81 = arith.addf %78, %80 : vector<8x128xf32>
    %82 = arith.negf %81 : vector<8x128xf32>
    %83 = math.exp %82 : vector<8x128xf32>
    %cst_26 = arith.constant 1.000000e+00 : f32
    %84 = vector.broadcast %cst_26 : f32 to vector<8x128xf32>
    %85 = arith.addf %84, %83 : vector<8x128xf32>
    %86 = arith.divf %84, %85 : vector<8x128xf32>
    %87 = vector.extract_strided_slice %86 {offsets = [0, 0], sizes = [8, 32], strides = [1, 1]} : vector<8x128xf32> to vector<8x32xf32>
    %88 = vector.extract_strided_slice %86 {offsets = [0, 32], sizes = [8, 32], strides = [1, 1]} : vector<8x128xf32> to vector<8x32xf32>
    %89 = vector.extract_strided_slice %86 {offsets = [0, 64], sizes = [8, 32], strides = [1, 1]} : vector<8x128xf32> to vector<8x32xf32>
    %cst_27 = arith.constant 2.000000e+00 : f32
    %90 = vector.broadcast %cst_27 : f32 to vector<8x32xf32>
    %91 = arith.mulf %90, %89 : vector<8x32xf32>
    %cst_28 = arith.constant 1.000000e+00 : f32
    %92 = vector.broadcast %cst_28 : f32 to vector<8x32xf32>
    %93 = arith.subf %91, %92 : vector<8x32xf32>
    %94 = vector.extract_strided_slice %86 {offsets = [0, 96], sizes = [8, 32], strides = [1, 1]} : vector<8x128xf32> to vector<8x32xf32>
    %95 = arith.mulf %88, %74 : vector<8x32xf32>
    %96 = arith.mulf %87, %93 : vector<8x32xf32>
    %97 = arith.addf %95, %96 : vector<8x32xf32>
    %98 = math.tanh %97 : vector<8x32xf32>
    %99 = arith.mulf %94, %98 : vector<8x32xf32>
    %c24 = arith.constant 24 : index
    %c0_29 = arith.constant 0 : index
    %100 = vector.load %arg12[%c24, %c0_29] : memref<64x32xf32, #tpu.memory_space<vmem>>, vector<8x32xf32>
    tpu.vector_store %arg12[%c24, %c0_29], %99 {strides = array<i32>} : memref<64x32xf32, #tpu.memory_space<vmem>>, vector<8x32xf32>,
    %101 = vector.extract_strided_slice %5 {offsets = [32, 0], sizes = [8, 128], strides = [1, 1]} : vector<64x128xf32> to vector<8x128xf32>
    %102 = arith.truncf %99 : vector<8x32xf32> to vector<8x32xbf16>
    %cst_30 = arith.constant dense<0.000000e+00> : vector<8x128xf32>
    %103 = tpu.matmul %102, %6, %cst_30 {dimension_numbers = #tpu.dot_dimension_numbers<[1], [0], [0], [1], [0, 0, 1, 1], [], []>} : vector<8x32xbf16>, vector<32x128xbf16>, vector<8x128xf32> -> vector<8x128xf32>
    %104 = arith.addf %101, %103 : vector<8x128xf32>
    %105 = arith.negf %104 : vector<8x128xf32>
    %106 = math.exp %105 : vector<8x128xf32>
    %cst_31 = arith.constant 1.000000e+00 : f32
    %107 = vector.broadcast %cst_31 : f32 to vector<8x128xf32>
    %108 = arith.addf %107, %106 : vector<8x128xf32>
    %109 = arith.divf %107, %108 : vector<8x128xf32>
    %110 = vector.extract_strided_slice %109 {offsets = [0, 0], sizes = [8, 32], strides = [1, 1]} : vector<8x128xf32> to vector<8x32xf32>
    %111 = vector.extract_strided_slice %109 {offsets = [0, 32], sizes = [8, 32], strides = [1, 1]} : vector<8x128xf32> to vector<8x32xf32>
    %112 = vector.extract_strided_slice %109 {offsets = [0, 64], sizes = [8, 32], strides = [1, 1]} : vector<8x128xf32> to vector<8x32xf32>
    %cst_32 = arith.constant 2.000000e+00 : f32
    %113 = vector.broadcast %cst_32 : f32 to vector<8x32xf32>
    %114 = arith.mulf %113, %112 : vector<8x32xf32>
    %cst_33 = arith.constant 1.000000e+00 : f32
    %115 = vector.broadcast %cst_33 : f32 to vector<8x32xf32>
    %116 = arith.subf %114, %115 : vector<8x32xf32>
    %117 = vector.extract_strided_slice %109 {offsets = [0, 96], sizes = [8, 32], strides = [1, 1]} : vector<8x128xf32> to vector<8x32xf32>
    %118 = arith.mulf %111, %97 : vector<8x32xf32>
    %119 = arith.mulf %110, %116 : vector<8x32xf32>
    %120 = arith.addf %118, %119 : vector<8x32xf32>
    %121 = math.tanh %120 : vector<8x32xf32>
    %122 = arith.mulf %117, %121 : vector<8x32xf32>
    %c32 = arith.constant 32 : index
    %c0_34 = arith.constant 0 : index
    %123 = vector.load %arg12[%c32, %c0_34] : memref<64x32xf32, #tpu.memory_space<vmem>>, vector<8x32xf32>
    tpu.vector_store %arg12[%c32, %c0_34], %122 {strides = array<i32>} : memref<64x32xf32, #tpu.memory_space<vmem>>, vector<8x32xf32>,
    %124 = vector.extract_strided_slice %5 {offsets = [40, 0], sizes = [8, 128], strides = [1, 1]} : vector<64x128xf32> to vector<8x128xf32>
    %125 = arith.truncf %122 : vector<8x32xf32> to vector<8x32xbf16>
    %cst_35 = arith.constant dense<0.000000e+00> : vector<8x128xf32>
    %126 = tpu.matmul %125, %6, %cst_35 {dimension_numbers = #tpu.dot_dimension_numbers<[1], [0], [0], [1], [0, 0, 1, 1], [], []>} : vector<8x32xbf16>, vector<32x128xbf16>, vector<8x128xf32> -> vector<8x128xf32>
    %127 = arith.addf %124, %126 : vector<8x128xf32>
    %128 = arith.negf %127 : vector<8x128xf32>
    %129 = math.exp %128 : vector<8x128xf32>
    %cst_36 = arith.constant 1.000000e+00 : f32
    %130 = vector.broadcast %cst_36 : f32 to vector<8x128xf32>
    %131 = arith.addf %130, %129 : vector<8x128xf32>
    %132 = arith.divf %130, %131 : vector<8x128xf32>
    %133 = vector.extract_strided_slice %132 {offsets = [0, 0], sizes = [8, 32], strides = [1, 1]} : vector<8x128xf32> to vector<8x32xf32>
    %134 = vector.extract_strided_slice %132 {offsets = [0, 32], sizes = [8, 32], strides = [1, 1]} : vector<8x128xf32> to vector<8x32xf32>
    %135 = vector.extract_strided_slice %132 {offsets = [0, 64], sizes = [8, 32], strides = [1, 1]} : vector<8x128xf32> to vector<8x32xf32>
    %cst_37 = arith.constant 2.000000e+00 : f32
    %136 = vector.broadcast %cst_37 : f32 to vector<8x32xf32>
    %137 = arith.mulf %136, %135 : vector<8x32xf32>
    %cst_38 = arith.constant 1.000000e+00 : f32
    %138 = vector.broadcast %cst_38 : f32 to vector<8x32xf32>
    %139 = arith.subf %137, %138 : vector<8x32xf32>
    %140 = vector.extract_strided_slice %132 {offsets = [0, 96], sizes = [8, 32], strides = [1, 1]} : vector<8x128xf32> to vector<8x32xf32>
    %141 = arith.mulf %134, %120 : vector<8x32xf32>
    %142 = arith.mulf %133, %139 : vector<8x32xf32>
    %143 = arith.addf %141, %142 : vector<8x32xf32>
    %144 = math.tanh %143 : vector<8x32xf32>
    %145 = arith.mulf %140, %144 : vector<8x32xf32>
    %c40 = arith.constant 40 : index
    %c0_39 = arith.constant 0 : index
    %146 = vector.load %arg12[%c40, %c0_39] : memref<64x32xf32, #tpu.memory_space<vmem>>, vector<8x32xf32>
    tpu.vector_store %arg12[%c40, %c0_39], %145 {strides = array<i32>} : memref<64x32xf32, #tpu.memory_space<vmem>>, vector<8x32xf32>,
    %147 = vector.extract_strided_slice %5 {offsets = [48, 0], sizes = [8, 128], strides = [1, 1]} : vector<64x128xf32> to vector<8x128xf32>
    %148 = arith.truncf %145 : vector<8x32xf32> to vector<8x32xbf16>
    %cst_40 = arith.constant dense<0.000000e+00> : vector<8x128xf32>
    %149 = tpu.matmul %148, %6, %cst_40 {dimension_numbers = #tpu.dot_dimension_numbers<[1], [0], [0], [1], [0, 0, 1, 1], [], []>} : vector<8x32xbf16>, vector<32x128xbf16>, vector<8x128xf32> -> vector<8x128xf32>
    %150 = arith.addf %147, %149 : vector<8x128xf32>
    %151 = arith.negf %150 : vector<8x128xf32>
    %152 = math.exp %151 : vector<8x128xf32>
    %cst_41 = arith.constant 1.000000e+00 : f32
    %153 = vector.broadcast %cst_41 : f32 to vector<8x128xf32>
    %154 = arith.addf %153, %152 : vector<8x128xf32>
    %155 = arith.divf %153, %154 : vector<8x128xf32>
    %156 = vector.extract_strided_slice %155 {offsets = [0, 0], sizes = [8, 32], strides = [1, 1]} : vector<8x128xf32> to vector<8x32xf32>
    %157 = vector.extract_strided_slice %155 {offsets = [0, 32], sizes = [8, 32], strides = [1, 1]} : vector<8x128xf32> to vector<8x32xf32>
    %158 = vector.extract_strided_slice %155 {offsets = [0, 64], sizes = [8, 32], strides = [1, 1]} : vector<8x128xf32> to vector<8x32xf32>
    %cst_42 = arith.constant 2.000000e+00 : f32
    %159 = vector.broadcast %cst_42 : f32 to vector<8x32xf32>
    %160 = arith.mulf %159, %158 : vector<8x32xf32>
    %cst_43 = arith.constant 1.000000e+00 : f32
    %161 = vector.broadcast %cst_43 : f32 to vector<8x32xf32>
    %162 = arith.subf %160, %161 : vector<8x32xf32>
    %163 = vector.extract_strided_slice %155 {offsets = [0, 96], sizes = [8, 32], strides = [1, 1]} : vector<8x128xf32> to vector<8x32xf32>
    %164 = arith.mulf %157, %143 : vector<8x32xf32>
    %165 = arith.mulf %156, %162 : vector<8x32xf32>
    %166 = arith.addf %164, %165 : vector<8x32xf32>
    %167 = math.tanh %166 : vector<8x32xf32>
    %168 = arith.mulf %163, %167 : vector<8x32xf32>
    %c48 = arith.constant 48 : index
    %c0_44 = arith.constant 0 : index
    %169 = vector.load %arg12[%c48, %c0_44] : memref<64x32xf32, #tpu.memory_space<vmem>>, vector<8x32xf32>
    tpu.vector_store %arg12[%c48, %c0_44], %168 {strides = array<i32>} : memref<64x32xf32, #tpu.memory_space<vmem>>, vector<8x32xf32>,
    %170 = vector.extract_strided_slice %5 {offsets = [56, 0], sizes = [8, 128], strides = [1, 1]} : vector<64x128xf32> to vector<8x128xf32>
    %171 = arith.truncf %168 : vector<8x32xf32> to vector<8x32xbf16>
    %cst_45 = arith.constant dense<0.000000e+00> : vector<8x128xf32>
    %172 = tpu.matmul %171, %6, %cst_45 {dimension_numbers = #tpu.dot_dimension_numbers<[1], [0], [0], [1], [0, 0, 1, 1], [], []>} : vector<8x32xbf16>, vector<32x128xbf16>, vector<8x128xf32> -> vector<8x128xf32>
    %173 = arith.addf %170, %172 : vector<8x128xf32>
    %174 = arith.negf %173 : vector<8x128xf32>
    %175 = math.exp %174 : vector<8x128xf32>
    %cst_46 = arith.constant 1.000000e+00 : f32
    %176 = vector.broadcast %cst_46 : f32 to vector<8x128xf32>
    %177 = arith.addf %176, %175 : vector<8x128xf32>
    %178 = arith.divf %176, %177 : vector<8x128xf32>
    %179 = vector.extract_strided_slice %178 {offsets = [0, 0], sizes = [8, 32], strides = [1, 1]} : vector<8x128xf32> to vector<8x32xf32>
    %180 = vector.extract_strided_slice %178 {offsets = [0, 32], sizes = [8, 32], strides = [1, 1]} : vector<8x128xf32> to vector<8x32xf32>
    %181 = vector.extract_strided_slice %178 {offsets = [0, 64], sizes = [8, 32], strides = [1, 1]} : vector<8x128xf32> to vector<8x32xf32>
    %cst_47 = arith.constant 2.000000e+00 : f32
    %182 = vector.broadcast %cst_47 : f32 to vector<8x32xf32>
    %183 = arith.mulf %182, %181 : vector<8x32xf32>
    %cst_48 = arith.constant 1.000000e+00 : f32
    %184 = vector.broadcast %cst_48 : f32 to vector<8x32xf32>
    %185 = arith.subf %183, %184 : vector<8x32xf32>
    %186 = vector.extract_strided_slice %178 {offsets = [0, 96], sizes = [8, 32], strides = [1, 1]} : vector<8x128xf32> to vector<8x32xf32>
    %187 = arith.mulf %180, %166 : vector<8x32xf32>
    %188 = arith.mulf %179, %185 : vector<8x32xf32>
    %189 = arith.addf %187, %188 : vector<8x32xf32>
    %190 = math.tanh %189 : vector<8x32xf32>
    %191 = arith.mulf %186, %190 : vector<8x32xf32>
    %c56 = arith.constant 56 : index
    %c0_49 = arith.constant 0 : index
    %192 = vector.load %arg12[%c56, %c0_49] : memref<64x32xf32, #tpu.memory_space<vmem>>, vector<8x32xf32>
    tpu.vector_store %arg12[%c56, %c0_49], %191 {strides = array<i32>} : memref<64x32xf32, #tpu.memory_space<vmem>>, vector<8x32xf32>,
    %c0_50 = arith.constant 0 : index
    %c0_51 = arith.constant 0 : index
    %c0_52 = arith.constant 0 : index
    %193 = vector.load %arg10[%c0_50, %c0_51, %c0_52] : memref<2x8x32xf32, #tpu.memory_space<vmem>>, vector<1x8x32xf32>
    %194 = vector.shape_cast %193 : vector<1x8x32xf32> to vector<8x32xf32>
    %195 = vector.shape_cast %191 : vector<8x32xf32> to vector<1x8x32xf32>
    tpu.vector_store %arg10[%c0_50, %c0_51, %c0_52], %195 {strides = array<i32>} : memref<2x8x32xf32, #tpu.memory_space<vmem>>, vector<1x8x32xf32>,
    %c0_53 = arith.constant 0 : index
    %c0_54 = arith.constant 0 : index
    %c0_55 = arith.constant 0 : index
    %196 = vector.load %arg11[%c0_53, %c0_54, %c0_55] : memref<2x8x32xf32, #tpu.memory_space<vmem>>, vector<1x8x32xf32>
    %197 = vector.shape_cast %196 : vector<1x8x32xf32> to vector<8x32xf32>
    %198 = vector.shape_cast %189 : vector<8x32xf32> to vector<1x8x32xf32>
    tpu.vector_store %arg11[%c0_53, %c0_54, %c0_55], %198 {strides = array<i32>} : memref<2x8x32xf32, #tpu.memory_space<vmem>>, vector<1x8x32xf32>,
    %c0_56 = arith.constant 0 : index
    %c0_57 = arith.constant 0 : index
    %199 = vector.load %arg12[%c0_56, %c0_57] : memref<64x32xf32, #tpu.memory_space<vmem>>, vector<64x32xf32>
    %200 = arith.truncf %199 : vector<64x32xf32> to vector<64x32xbf16>
    %c0_58 = arith.constant 0 : index
    %c0_59 = arith.constant 0 : index
    %201 = vector.load %arg4[%c0_58, %c0_59] : memref<32x128xbf16, #tpu.memory_space<vmem>>, vector<32x128xbf16>
    %cst_60 = arith.constant dense<0.000000e+00> : vector<64x128xf32>
    %202 = tpu.matmul %200, %201, %cst_60 {dimension_numbers = #tpu.dot_dimension_numbers<[1], [0], [0], [1], [0, 0, 1, 1], [], []>} : vector<64x32xbf16>, vector<32x128xbf16>, vector<64x128xf32> -> vector<64x128xf32>
    %c0_61 = arith.constant 0 : index
    %c0_62 = arith.constant 0 : index
    %203 = vector.load %arg6[%c0_61, %c0_62] : memref<1x128xf32, #tpu.memory_space<vmem>>, vector<1x128xf32>
    %204 = vector.broadcast %203 : vector<1x128xf32> to vector<64x128xf32>
    %205 = arith.addf %202, %204 : vector<64x128xf32>
    %c0_63 = arith.constant 0 : index
    %c0_64 = arith.constant 0 : index
    %206 = vector.load %arg5[%c0_63, %c0_64] : memref<32x128xbf16, #tpu.memory_space<vmem>>, vector<32x128xbf16>
    %cst_65 = arith.constant 0.000000e+00 : f32
    %207 = vector.broadcast %cst_65 : f32 to vector<8x32xf32>
    %cst_66 = arith.constant 0.000000e+00 : f32
    %208 = vector.broadcast %cst_66 : f32 to vector<8x32xf32>
    %209 = vector.extract_strided_slice %205 {offsets = [0, 0], sizes = [8, 128], strides = [1, 1]} : vector<64x128xf32> to vector<8x128xf32>
    %210 = arith.truncf %207 : vector<8x32xf32> to vector<8x32xbf16>
    %cst_67 = arith.constant dense<0.000000e+00> : vector<8x128xf32>
    %211 = tpu.matmul %210, %206, %cst_67 {dimension_numbers = #tpu.dot_dimension_numbers<[1], [0], [0], [1], [0, 0, 1, 1], [], []>} : vector<8x32xbf16>, vector<32x128xbf16>, vector<8x128xf32> -> vector<8x128xf32>
    %212 = arith.addf %209, %211 : vector<8x128xf32>
    %213 = arith.negf %212 : vector<8x128xf32>
    %214 = math.exp %213 : vector<8x128xf32>
    %cst_68 = arith.constant 1.000000e+00 : f32
    %215 = vector.broadcast %cst_68 : f32 to vector<8x128xf32>
    %216 = arith.addf %215, %214 : vector<8x128xf32>
    %217 = arith.divf %215, %216 : vector<8x128xf32>
    %218 = vector.extract_strided_slice %217 {offsets = [0, 0], sizes = [8, 32], strides = [1, 1]} : vector<8x128xf32> to vector<8x32xf32>
    %219 = vector.extract_strided_slice %217 {offsets = [0, 32], sizes = [8, 32], strides = [1, 1]} : vector<8x128xf32> to vector<8x32xf32>
    %220 = vector.extract_strided_slice %217 {offsets = [0, 64], sizes = [8, 32], strides = [1, 1]} : vector<8x128xf32> to vector<8x32xf32>
    %cst_69 = arith.constant 2.000000e+00 : f32
    %221 = vector.broadcast %cst_69 : f32 to vector<8x32xf32>
    %222 = arith.mulf %221, %220 : vector<8x32xf32>
    %cst_70 = arith.constant 1.000000e+00 : f32
    %223 = vector.broadcast %cst_70 : f32 to vector<8x32xf32>
    %224 = arith.subf %222, %223 : vector<8x32xf32>
    %225 = vector.extract_strided_slice %217 {offsets = [0, 96], sizes = [8, 32], strides = [1, 1]} : vector<8x128xf32> to vector<8x32xf32>
    %226 = arith.mulf %219, %208 : vector<8x32xf32>
    %227 = arith.mulf %218, %224 : vector<8x32xf32>
    %228 = arith.addf %226, %227 : vector<8x32xf32>
    %229 = math.tanh %228 : vector<8x32xf32>
    %230 = arith.mulf %225, %229 : vector<8x32xf32>
    %c0_71 = arith.constant 0 : index
    %c0_72 = arith.constant 0 : index
    %231 = vector.load %arg12[%c0_71, %c0_72] : memref<64x32xf32, #tpu.memory_space<vmem>>, vector<8x32xf32>
    tpu.vector_store %arg12[%c0_71, %c0_72], %230 {strides = array<i32>} : memref<64x32xf32, #tpu.memory_space<vmem>>, vector<8x32xf32>,
    %232 = vector.extract_strided_slice %205 {offsets = [8, 0], sizes = [8, 128], strides = [1, 1]} : vector<64x128xf32> to vector<8x128xf32>
    %233 = arith.truncf %230 : vector<8x32xf32> to vector<8x32xbf16>
    %cst_73 = arith.constant dense<0.000000e+00> : vector<8x128xf32>
    %234 = tpu.matmul %233, %206, %cst_73 {dimension_numbers = #tpu.dot_dimension_numbers<[1], [0], [0], [1], [0, 0, 1, 1], [], []>} : vector<8x32xbf16>, vector<32x128xbf16>, vector<8x128xf32> -> vector<8x128xf32>
    %235 = arith.addf %232, %234 : vector<8x128xf32>
    %236 = arith.negf %235 : vector<8x128xf32>
    %237 = math.exp %236 : vector<8x128xf32>
    %cst_74 = arith.constant 1.000000e+00 : f32
    %238 = vector.broadcast %cst_74 : f32 to vector<8x128xf32>
    %239 = arith.addf %238, %237 : vector<8x128xf32>
    %240 = arith.divf %238, %239 : vector<8x128xf32>
    %241 = vector.extract_strided_slice %240 {offsets = [0, 0], sizes = [8, 32], strides = [1, 1]} : vector<8x128xf32> to vector<8x32xf32>
    %242 = vector.extract_strided_slice %240 {offsets = [0, 32], sizes = [8, 32], strides = [1, 1]} : vector<8x128xf32> to vector<8x32xf32>
    %243 = vector.extract_strided_slice %240 {offsets = [0, 64], sizes = [8, 32], strides = [1, 1]} : vector<8x128xf32> to vector<8x32xf32>
    %cst_75 = arith.constant 2.000000e+00 : f32
    %244 = vector.broadcast %cst_75 : f32 to vector<8x32xf32>
    %245 = arith.mulf %244, %243 : vector<8x32xf32>
    %cst_76 = arith.constant 1.000000e+00 : f32
    %246 = vector.broadcast %cst_76 : f32 to vector<8x32xf32>
    %247 = arith.subf %245, %246 : vector<8x32xf32>
    %248 = vector.extract_strided_slice %240 {offsets = [0, 96], sizes = [8, 32], strides = [1, 1]} : vector<8x128xf32> to vector<8x32xf32>
    %249 = arith.mulf %242, %228 : vector<8x32xf32>
    %250 = arith.mulf %241, %247 : vector<8x32xf32>
    %251 = arith.addf %249, %250 : vector<8x32xf32>
    %252 = math.tanh %251 : vector<8x32xf32>
    %253 = arith.mulf %248, %252 : vector<8x32xf32>
    %c8_77 = arith.constant 8 : index
    %c0_78 = arith.constant 0 : index
    %254 = vector.load %arg12[%c8_77, %c0_78] : memref<64x32xf32, #tpu.memory_space<vmem>>, vector<8x32xf32>
    tpu.vector_store %arg12[%c8_77, %c0_78], %253 {strides = array<i32>} : memref<64x32xf32, #tpu.memory_space<vmem>>, vector<8x32xf32>,
    %255 = vector.extract_strided_slice %205 {offsets = [16, 0], sizes = [8, 128], strides = [1, 1]} : vector<64x128xf32> to vector<8x128xf32>
    %256 = arith.truncf %253 : vector<8x32xf32> to vector<8x32xbf16>
    %cst_79 = arith.constant dense<0.000000e+00> : vector<8x128xf32>
    %257 = tpu.matmul %256, %206, %cst_79 {dimension_numbers = #tpu.dot_dimension_numbers<[1], [0], [0], [1], [0, 0, 1, 1], [], []>} : vector<8x32xbf16>, vector<32x128xbf16>, vector<8x128xf32> -> vector<8x128xf32>
    %258 = arith.addf %255, %257 : vector<8x128xf32>
    %259 = arith.negf %258 : vector<8x128xf32>
    %260 = math.exp %259 : vector<8x128xf32>
    %cst_80 = arith.constant 1.000000e+00 : f32
    %261 = vector.broadcast %cst_80 : f32 to vector<8x128xf32>
    %262 = arith.addf %261, %260 : vector<8x128xf32>
    %263 = arith.divf %261, %262 : vector<8x128xf32>
    %264 = vector.extract_strided_slice %263 {offsets = [0, 0], sizes = [8, 32], strides = [1, 1]} : vector<8x128xf32> to vector<8x32xf32>
    %265 = vector.extract_strided_slice %263 {offsets = [0, 32], sizes = [8, 32], strides = [1, 1]} : vector<8x128xf32> to vector<8x32xf32>
    %266 = vector.extract_strided_slice %263 {offsets = [0, 64], sizes = [8, 32], strides = [1, 1]} : vector<8x128xf32> to vector<8x32xf32>
    %cst_81 = arith.constant 2.000000e+00 : f32
    %267 = vector.broadcast %cst_81 : f32 to vector<8x32xf32>
    %268 = arith.mulf %267, %266 : vector<8x32xf32>
    %cst_82 = arith.constant 1.000000e+00 : f32
    %269 = vector.broadcast %cst_82 : f32 to vector<8x32xf32>
    %270 = arith.subf %268, %269 : vector<8x32xf32>
    %271 = vector.extract_strided_slice %263 {offsets = [0, 96], sizes = [8, 32], strides = [1, 1]} : vector<8x128xf32> to vector<8x32xf32>
    %272 = arith.mulf %265, %251 : vector<8x32xf32>
    %273 = arith.mulf %264, %270 : vector<8x32xf32>
    %274 = arith.addf %272, %273 : vector<8x32xf32>
    %275 = math.tanh %274 : vector<8x32xf32>
    %276 = arith.mulf %271, %275 : vector<8x32xf32>
    %c16_83 = arith.constant 16 : index
    %c0_84 = arith.constant 0 : index
    %277 = vector.load %arg12[%c16_83, %c0_84] : memref<64x32xf32, #tpu.memory_space<vmem>>, vector<8x32xf32>
    tpu.vector_store %arg12[%c16_83, %c0_84], %276 {strides = array<i32>} : memref<64x32xf32, #tpu.memory_space<vmem>>, vector<8x32xf32>,
    %278 = vector.extract_strided_slice %205 {offsets = [24, 0], sizes = [8, 128], strides = [1, 1]} : vector<64x128xf32> to vector<8x128xf32>
    %279 = arith.truncf %276 : vector<8x32xf32> to vector<8x32xbf16>
    %cst_85 = arith.constant dense<0.000000e+00> : vector<8x128xf32>
    %280 = tpu.matmul %279, %206, %cst_85 {dimension_numbers = #tpu.dot_dimension_numbers<[1], [0], [0], [1], [0, 0, 1, 1], [], []>} : vector<8x32xbf16>, vector<32x128xbf16>, vector<8x128xf32> -> vector<8x128xf32>
    %281 = arith.addf %278, %280 : vector<8x128xf32>
    %282 = arith.negf %281 : vector<8x128xf32>
    %283 = math.exp %282 : vector<8x128xf32>
    %cst_86 = arith.constant 1.000000e+00 : f32
    %284 = vector.broadcast %cst_86 : f32 to vector<8x128xf32>
    %285 = arith.addf %284, %283 : vector<8x128xf32>
    %286 = arith.divf %284, %285 : vector<8x128xf32>
    %287 = vector.extract_strided_slice %286 {offsets = [0, 0], sizes = [8, 32], strides = [1, 1]} : vector<8x128xf32> to vector<8x32xf32>
    %288 = vector.extract_strided_slice %286 {offsets = [0, 32], sizes = [8, 32], strides = [1, 1]} : vector<8x128xf32> to vector<8x32xf32>
    %289 = vector.extract_strided_slice %286 {offsets = [0, 64], sizes = [8, 32], strides = [1, 1]} : vector<8x128xf32> to vector<8x32xf32>
    %cst_87 = arith.constant 2.000000e+00 : f32
    %290 = vector.broadcast %cst_87 : f32 to vector<8x32xf32>
    %291 = arith.mulf %290, %289 : vector<8x32xf32>
    %cst_88 = arith.constant 1.000000e+00 : f32
    %292 = vector.broadcast %cst_88 : f32 to vector<8x32xf32>
    %293 = arith.subf %291, %292 : vector<8x32xf32>
    %294 = vector.extract_strided_slice %286 {offsets = [0, 96], sizes = [8, 32], strides = [1, 1]} : vector<8x128xf32> to vector<8x32xf32>
    %295 = arith.mulf %288, %274 : vector<8x32xf32>
    %296 = arith.mulf %287, %293 : vector<8x32xf32>
    %297 = arith.addf %295, %296 : vector<8x32xf32>
    %298 = math.tanh %297 : vector<8x32xf32>
    %299 = arith.mulf %294, %298 : vector<8x32xf32>
    %c24_89 = arith.constant 24 : index
    %c0_90 = arith.constant 0 : index
    %300 = vector.load %arg12[%c24_89, %c0_90] : memref<64x32xf32, #tpu.memory_space<vmem>>, vector<8x32xf32>
    tpu.vector_store %arg12[%c24_89, %c0_90], %299 {strides = array<i32>} : memref<64x32xf32, #tpu.memory_space<vmem>>, vector<8x32xf32>,
    %301 = vector.extract_strided_slice %205 {offsets = [32, 0], sizes = [8, 128], strides = [1, 1]} : vector<64x128xf32> to vector<8x128xf32>
    %302 = arith.truncf %299 : vector<8x32xf32> to vector<8x32xbf16>
    %cst_91 = arith.constant dense<0.000000e+00> : vector<8x128xf32>
    %303 = tpu.matmul %302, %206, %cst_91 {dimension_numbers = #tpu.dot_dimension_numbers<[1], [0], [0], [1], [0, 0, 1, 1], [], []>} : vector<8x32xbf16>, vector<32x128xbf16>, vector<8x128xf32> -> vector<8x128xf32>
    %304 = arith.addf %301, %303 : vector<8x128xf32>
    %305 = arith.negf %304 : vector<8x128xf32>
    %306 = math.exp %305 : vector<8x128xf32>
    %cst_92 = arith.constant 1.000000e+00 : f32
    %307 = vector.broadcast %cst_92 : f32 to vector<8x128xf32>
    %308 = arith.addf %307, %306 : vector<8x128xf32>
    %309 = arith.divf %307, %308 : vector<8x128xf32>
    %310 = vector.extract_strided_slice %309 {offsets = [0, 0], sizes = [8, 32], strides = [1, 1]} : vector<8x128xf32> to vector<8x32xf32>
    %311 = vector.extract_strided_slice %309 {offsets = [0, 32], sizes = [8, 32], strides = [1, 1]} : vector<8x128xf32> to vector<8x32xf32>
    %312 = vector.extract_strided_slice %309 {offsets = [0, 64], sizes = [8, 32], strides = [1, 1]} : vector<8x128xf32> to vector<8x32xf32>
    %cst_93 = arith.constant 2.000000e+00 : f32
    %313 = vector.broadcast %cst_93 : f32 to vector<8x32xf32>
    %314 = arith.mulf %313, %312 : vector<8x32xf32>
    %cst_94 = arith.constant 1.000000e+00 : f32
    %315 = vector.broadcast %cst_94 : f32 to vector<8x32xf32>
    %316 = arith.subf %314, %315 : vector<8x32xf32>
    %317 = vector.extract_strided_slice %309 {offsets = [0, 96], sizes = [8, 32], strides = [1, 1]} : vector<8x128xf32> to vector<8x32xf32>
    %318 = arith.mulf %311, %297 : vector<8x32xf32>
    %319 = arith.mulf %310, %316 : vector<8x32xf32>
    %320 = arith.addf %318, %319 : vector<8x32xf32>
    %321 = math.tanh %320 : vector<8x32xf32>
    %322 = arith.mulf %317, %321 : vector<8x32xf32>
    %c32_95 = arith.constant 32 : index
    %c0_96 = arith.constant 0 : index
    %323 = vector.load %arg12[%c32_95, %c0_96] : memref<64x32xf32, #tpu.memory_space<vmem>>, vector<8x32xf32>
    tpu.vector_store %arg12[%c32_95, %c0_96], %322 {strides = array<i32>} : memref<64x32xf32, #tpu.memory_space<vmem>>, vector<8x32xf32>,
    %324 = vector.extract_strided_slice %205 {offsets = [40, 0], sizes = [8, 128], strides = [1, 1]} : vector<64x128xf32> to vector<8x128xf32>
    %325 = arith.truncf %322 : vector<8x32xf32> to vector<8x32xbf16>
    %cst_97 = arith.constant dense<0.000000e+00> : vector<8x128xf32>
    %326 = tpu.matmul %325, %206, %cst_97 {dimension_numbers = #tpu.dot_dimension_numbers<[1], [0], [0], [1], [0, 0, 1, 1], [], []>} : vector<8x32xbf16>, vector<32x128xbf16>, vector<8x128xf32> -> vector<8x128xf32>
    %327 = arith.addf %324, %326 : vector<8x128xf32>
    %328 = arith.negf %327 : vector<8x128xf32>
    %329 = math.exp %328 : vector<8x128xf32>
    %cst_98 = arith.constant 1.000000e+00 : f32
    %330 = vector.broadcast %cst_98 : f32 to vector<8x128xf32>
    %331 = arith.addf %330, %329 : vector<8x128xf32>
    %332 = arith.divf %330, %331 : vector<8x128xf32>
    %333 = vector.extract_strided_slice %332 {offsets = [0, 0], sizes = [8, 32], strides = [1, 1]} : vector<8x128xf32> to vector<8x32xf32>
    %334 = vector.extract_strided_slice %332 {offsets = [0, 32], sizes = [8, 32], strides = [1, 1]} : vector<8x128xf32> to vector<8x32xf32>
    %335 = vector.extract_strided_slice %332 {offsets = [0, 64], sizes = [8, 32], strides = [1, 1]} : vector<8x128xf32> to vector<8x32xf32>
    %cst_99 = arith.constant 2.000000e+00 : f32
    %336 = vector.broadcast %cst_99 : f32 to vector<8x32xf32>
    %337 = arith.mulf %336, %335 : vector<8x32xf32>
    %cst_100 = arith.constant 1.000000e+00 : f32
    %338 = vector.broadcast %cst_100 : f32 to vector<8x32xf32>
    %339 = arith.subf %337, %338 : vector<8x32xf32>
    %340 = vector.extract_strided_slice %332 {offsets = [0, 96], sizes = [8, 32], strides = [1, 1]} : vector<8x128xf32> to vector<8x32xf32>
    %341 = arith.mulf %334, %320 : vector<8x32xf32>
    %342 = arith.mulf %333, %339 : vector<8x32xf32>
    %343 = arith.addf %341, %342 : vector<8x32xf32>
    %344 = math.tanh %343 : vector<8x32xf32>
    %345 = arith.mulf %340, %344 : vector<8x32xf32>
    %c40_101 = arith.constant 40 : index
    %c0_102 = arith.constant 0 : index
    %346 = vector.load %arg12[%c40_101, %c0_102] : memref<64x32xf32, #tpu.memory_space<vmem>>, vector<8x32xf32>
    tpu.vector_store %arg12[%c40_101, %c0_102], %345 {strides = array<i32>} : memref<64x32xf32, #tpu.memory_space<vmem>>, vector<8x32xf32>,
    %347 = vector.extract_strided_slice %205 {offsets = [48, 0], sizes = [8, 128], strides = [1, 1]} : vector<64x128xf32> to vector<8x128xf32>
    %348 = arith.truncf %345 : vector<8x32xf32> to vector<8x32xbf16>
    %cst_103 = arith.constant dense<0.000000e+00> : vector<8x128xf32>
    %349 = tpu.matmul %348, %206, %cst_103 {dimension_numbers = #tpu.dot_dimension_numbers<[1], [0], [0], [1], [0, 0, 1, 1], [], []>} : vector<8x32xbf16>, vector<32x128xbf16>, vector<8x128xf32> -> vector<8x128xf32>
    %350 = arith.addf %347, %349 : vector<8x128xf32>
    %351 = arith.negf %350 : vector<8x128xf32>
    %352 = math.exp %351 : vector<8x128xf32>
    %cst_104 = arith.constant 1.000000e+00 : f32
    %353 = vector.broadcast %cst_104 : f32 to vector<8x128xf32>
    %354 = arith.addf %353, %352 : vector<8x128xf32>
    %355 = arith.divf %353, %354 : vector<8x128xf32>
    %356 = vector.extract_strided_slice %355 {offsets = [0, 0], sizes = [8, 32], strides = [1, 1]} : vector<8x128xf32> to vector<8x32xf32>
    %357 = vector.extract_strided_slice %355 {offsets = [0, 32], sizes = [8, 32], strides = [1, 1]} : vector<8x128xf32> to vector<8x32xf32>
    %358 = vector.extract_strided_slice %355 {offsets = [0, 64], sizes = [8, 32], strides = [1, 1]} : vector<8x128xf32> to vector<8x32xf32>
    %cst_105 = arith.constant 2.000000e+00 : f32
    %359 = vector.broadcast %cst_105 : f32 to vector<8x32xf32>
    %360 = arith.mulf %359, %358 : vector<8x32xf32>
    %cst_106 = arith.constant 1.000000e+00 : f32
    %361 = vector.broadcast %cst_106 : f32 to vector<8x32xf32>
    %362 = arith.subf %360, %361 : vector<8x32xf32>
    %363 = vector.extract_strided_slice %355 {offsets = [0, 96], sizes = [8, 32], strides = [1, 1]} : vector<8x128xf32> to vector<8x32xf32>
    %364 = arith.mulf %357, %343 : vector<8x32xf32>
    %365 = arith.mulf %356, %362 : vector<8x32xf32>
    %366 = arith.addf %364, %365 : vector<8x32xf32>
    %367 = math.tanh %366 : vector<8x32xf32>
    %368 = arith.mulf %363, %367 : vector<8x32xf32>
    %c48_107 = arith.constant 48 : index
    %c0_108 = arith.constant 0 : index
    %369 = vector.load %arg12[%c48_107, %c0_108] : memref<64x32xf32, #tpu.memory_space<vmem>>, vector<8x32xf32>
    tpu.vector_store %arg12[%c48_107, %c0_108], %368 {strides = array<i32>} : memref<64x32xf32, #tpu.memory_space<vmem>>, vector<8x32xf32>,
    %370 = vector.extract_strided_slice %205 {offsets = [56, 0], sizes = [8, 128], strides = [1, 1]} : vector<64x128xf32> to vector<8x128xf32>
    %371 = arith.truncf %368 : vector<8x32xf32> to vector<8x32xbf16>
    %cst_109 = arith.constant dense<0.000000e+00> : vector<8x128xf32>
    %372 = tpu.matmul %371, %206, %cst_109 {dimension_numbers = #tpu.dot_dimension_numbers<[1], [0], [0], [1], [0, 0, 1, 1], [], []>} : vector<8x32xbf16>, vector<32x128xbf16>, vector<8x128xf32> -> vector<8x128xf32>
    %373 = arith.addf %370, %372 : vector<8x128xf32>
    %374 = arith.negf %373 : vector<8x128xf32>
    %375 = math.exp %374 : vector<8x128xf32>
    %cst_110 = arith.constant 1.000000e+00 : f32
    %376 = vector.broadcast %cst_110 : f32 to vector<8x128xf32>
    %377 = arith.addf %376, %375 : vector<8x128xf32>
    %378 = arith.divf %376, %377 : vector<8x128xf32>
    %379 = vector.extract_strided_slice %378 {offsets = [0, 0], sizes = [8, 32], strides = [1, 1]} : vector<8x128xf32> to vector<8x32xf32>
    %380 = vector.extract_strided_slice %378 {offsets = [0, 32], sizes = [8, 32], strides = [1, 1]} : vector<8x128xf32> to vector<8x32xf32>
    %381 = vector.extract_strided_slice %378 {offsets = [0, 64], sizes = [8, 32], strides = [1, 1]} : vector<8x128xf32> to vector<8x32xf32>
    %cst_111 = arith.constant 2.000000e+00 : f32
    %382 = vector.broadcast %cst_111 : f32 to vector<8x32xf32>
    %383 = arith.mulf %382, %381 : vector<8x32xf32>
    %cst_112 = arith.constant 1.000000e+00 : f32
    %384 = vector.broadcast %cst_112 : f32 to vector<8x32xf32>
    %385 = arith.subf %383, %384 : vector<8x32xf32>
    %386 = vector.extract_strided_slice %378 {offsets = [0, 96], sizes = [8, 32], strides = [1, 1]} : vector<8x128xf32> to vector<8x32xf32>
    %387 = arith.mulf %380, %366 : vector<8x32xf32>
    %388 = arith.mulf %379, %385 : vector<8x32xf32>
    %389 = arith.addf %387, %388 : vector<8x32xf32>
    %390 = math.tanh %389 : vector<8x32xf32>
    %391 = arith.mulf %386, %390 : vector<8x32xf32>
    %c56_113 = arith.constant 56 : index
    %c0_114 = arith.constant 0 : index
    %392 = vector.load %arg12[%c56_113, %c0_114] : memref<64x32xf32, #tpu.memory_space<vmem>>, vector<8x32xf32>
    tpu.vector_store %arg12[%c56_113, %c0_114], %391 {strides = array<i32>} : memref<64x32xf32, #tpu.memory_space<vmem>>, vector<8x32xf32>,
    %c1 = arith.constant 1 : index
    %c0_115 = arith.constant 0 : index
    %c0_116 = arith.constant 0 : index
    %393 = vector.load %arg10[%c1, %c0_115, %c0_116] : memref<2x8x32xf32, #tpu.memory_space<vmem>>, vector<1x8x32xf32>
    %394 = vector.shape_cast %393 : vector<1x8x32xf32> to vector<8x32xf32>
    %395 = vector.shape_cast %391 : vector<8x32xf32> to vector<1x8x32xf32>
    tpu.vector_store %arg10[%c1, %c0_115, %c0_116], %395 {strides = array<i32>} : memref<2x8x32xf32, #tpu.memory_space<vmem>>, vector<1x8x32xf32>,
    %c1_117 = arith.constant 1 : index
    %c0_118 = arith.constant 0 : index
    %c0_119 = arith.constant 0 : index
    %396 = vector.load %arg11[%c1_117, %c0_118, %c0_119] : memref<2x8x32xf32, #tpu.memory_space<vmem>>, vector<1x8x32xf32>
    %397 = vector.shape_cast %396 : vector<1x8x32xf32> to vector<8x32xf32>
    %398 = vector.shape_cast %389 : vector<8x32xf32> to vector<1x8x32xf32>
    tpu.vector_store %arg11[%c1_117, %c0_118, %c0_119], %398 {strides = array<i32>} : memref<2x8x32xf32, #tpu.memory_space<vmem>>, vector<1x8x32xf32>,
    %c0_120 = arith.constant 0 : index
    %c0_121 = arith.constant 0 : index
    %399 = vector.load %arg12[%c0_120, %c0_121] : memref<64x32xf32, #tpu.memory_space<vmem>>, vector<64x32xf32>
    %cst_122 = arith.constant 0.000000e+00 : f32
    %400 = vector.broadcast %cst_122 : f32 to vector<64x32xf32>
    %401 = arith.maximumf %399, %400 : vector<64x32xf32>
    %402 = arith.truncf %401 : vector<64x32xf32> to vector<64x32xbf16>
    %c0_123 = arith.constant 0 : index
    %c0_124 = arith.constant 0 : index
    %403 = vector.load %arg7[%c0_123, %c0_124] : memref<32x128xbf16, #tpu.memory_space<vmem>>, vector<32x128xbf16>
    %cst_125 = arith.constant dense<0.000000e+00> : vector<64x128xf32>
    %404 = tpu.matmul %402, %403, %cst_125 {dimension_numbers = #tpu.dot_dimension_numbers<[1], [0], [0], [1], [0, 0, 1, 1], [], []>} : vector<64x32xbf16>, vector<32x128xbf16>, vector<64x128xf32> -> vector<64x128xf32>
    %c0_126 = arith.constant 0 : index
    %c0_127 = arith.constant 0 : index
    %405 = vector.load %arg8[%c0_126, %c0_127] : memref<1x128xf32, #tpu.memory_space<vmem>>, vector<1x128xf32>
    %406 = vector.broadcast %405 : vector<1x128xf32> to vector<64x128xf32>
    %407 = arith.addf %404, %406 : vector<64x128xf32>
    %c0_128 = arith.constant 0 : index
    %c0_129 = arith.constant 0 : index
    %408 = vector.load %arg9[%c0_128, %c0_129] : memref<64x128xf32, #tpu.memory_space<vmem>>, vector<64x128xf32>
    tpu.vector_store %arg9[%c0_128, %c0_129], %407 {strides = array<i32>} : memref<64x128xf32, #tpu.memory_space<vmem>>, vector<64x128xf32>,
    return
  }
}

</mosaic_0001>

<bundles_post_ra>
// kernel: lstm_forward.1
= control target key start
LH: loop header
LB: loop body
LE: loop exit
PB: predicated region body
PF: predicated region fallthrough
CT: control target
= control target key end

     0   :  { %vm79_vm0 = vcmask 130048   ;;  %v2113_v4 = vmov 0.0   ;;  %vm2114_vm1 = vmmov 0   ;;  %v2115_v8 = vmov 0   ;;  %s2117_s30 = smov 32   ;;  %s2118_s21 = smov 96   ;;  %s2617_s1 = inlined_call_operand.vmem [shape: bf16[16,128], index: 1, kind: input, shape index: {}]   ;;  %s2618_s0 = inlined_call_operand.vmem [shape: bf16[64,16], index: 0, kind: input, shape index: {}]   ;;  %s2619_s2 = inlined_call_operand.vmem [shape: bf16[32,128], index: 2, kind: input, shape index: {}]   ;;  %s2620_s3 = inlined_call_operand.vmem [shape: f32[1,128], index: 3, kind: input, shape index: {}]   ;;  %s2621_s4 = inlined_call_operand.vmem [shape: bf16[32,128], index: 4, kind: input, shape index: {}]   ;;  %s2622_s5 = inlined_call_operand.vmem [shape: bf16[32,128], index: 5, kind: input, shape index: {}]   ;;  %s2623_s6 = inlined_call_operand.vmem [shape: f32[1,128], index: 6, kind: input, shape index: {}]   ;;  %s2624_s10 = inlined_call_operand.vmem [shape: f32[2,8,32], index: 10, kind: output, shape index: {1}]   ;;  %s2625_s7 = inlined_call_operand.vmem [shape: bf16[32,128], index: 7, kind: input, shape index: {}]   ;;  %s2626_s11 = inlined_call_operand.vmem [shape: f32[2,8,32], index: 11, kind: output, shape index: {2}]   ;;  %s2627_s8 = inlined_call_operand.vmem [shape: f32[1,128], index: 8, kind: input, shape index: {}]   ;;  %s2628_s9 = inlined_call_operand.vmem [shape: f32[64,128], index: 9, kind: output, shape index: {0}]  }
   0x1   :  { %v2004_v0 = vld [vmem:[%s2617_s1] sm:$0xff]   ;;  %v2005_v1 = vld [vmem:[%s2618_s0 + $0x10] sm:$0xff]   ;;  %v2006_v2 = vld [vmem:[%s2618_s0 + $0x18] sm:$0xff]   ;;  %vm173_vm2 = vcmask 261120  }
   0x2   :  { %1996 = vmatprep.subr.bf16.mxu1 %v2004_v0  ;;  %1834 = vmatprep.subr.bf16.mxu0 %v2004_v0  ;;  %v2192_v3 = vld [vmem:[%s2619_s2] sm:$0xff]   ;;  %v2009_v6 = vld [vmem:[%s2618_s0 + $0x8] sm:$0xff]  }
   0x3   :  { %1997 = vmatpush3.bf16.msra.mxu1 %v2004_v0  ;;  %1840 = vmatprep.mubr.msk.bf16.mxu1 %vm79_vm0, %v2005_v1  ;;  %v2008_v5 = vld [vmem:[%s2618_s0] sm:$0xff]   ;;  %v2209_v7 = vld [vmem:[%s2619_s2 + $0x8] sm:$0xff]  }
   0x4   :  { %1835 = vmatpush3.bf16.msra.mxu0 %v2004_v0  ;;  %1844 = vmatprep.subr.bf16.mxu1 %v2113_v4  ;;  %v1693_v9 = vld [vmem:[%s2620_s3] ss:$0 sm:$0xff]  ;;  %s2116_s3 = smov 64  }
   0x5   :  { %1860 = vmatprep.subr.bf16.mxu0 %v2113_v4  ;;  %1836 = vmatprep.mubr.msk.bf16.mxu0 %vm79_vm0, %v2008_v5 }
   0x6   :  { %1841 = vmatmul.mubr.msk.bf16.vlgmr.msra.gmra.mrb[0].mxu1 %vm79_vm0, %v2006_v2 }
   0x7   :  { %1845 = vmatpush3.bf16.msra.mxu1 %v2192_v3  ;;  %1837 = vmatmul.mubr.msk.bf16.vlgmr.msra.gmra.mrb[0].mxu0 %vm79_vm0, %v2009_v6 }
   0x8   :  { %1846 = vmatprep.subr.bf16.mxu1 %v2113_v4  ;;  %1848 = vmatprep.mubr.msk.bf16.mxu1 %vm2114_vm1, %v2113_v4 }
   0x9   :  { %1861 = vmatpush3.bf16.msra.mxu0 %v2192_v3  ;;  %1864 = vmatprep.mubr.msk.bf16.mxu0 %vm2114_vm1, %v2113_v4 }
   0xa   :  { %1862 = vmatprep.subr.bf16.mxu0 %v2113_v4 }
   0xb   :  { %1847 = vmatpush3.bf16.msra.mxu1 %v2209_v7 }
   0xc   :  { %1852 = vmatprep.subr.bf16.mxu1 %v2113_v4 }
   0xd   :  { %1863 = vmatpush3.bf16.msra.mxu0 %v2209_v7 }
   0xe   :  { %1849 = vmatmul.mubr.bf16.vlgmr.msra.gmra.mrb[4].mxu1 %v2115_v8  ;;  %1876 = vmatprep.subr.bf16.mxu0 %v2113_v4 }
   0xf   :  { %1853 = vmatpush3.bf16.msra.mxu1 %v2192_v3  ;;  %1856 = vmatprep.mubr.msk.bf16.mxu1 %vm2114_vm1, %v2113_v4 }
  0x10   :  { %1854 = vmatprep.subr.bf16.mxu1 %v2113_v4 }
  0x13   :  { %1855 = vmatpush3.bf16.msra.mxu1 %v2209_v7 }
  0x14   :  { %1868 = vmatprep.subr.bf16.mxu1 %v2113_v4 }
  0xd9   :  { %v1842_v10 = vpop.f32.mrb[0].mxu1 }
  0xda   :  { %v2232_v11 = vadd.f32 %v1842_v10, %v1693_v9  ;;  %v142_v12 = vpop.f32.mrb[1].mxu1  ;;  %v1838_v13 = vpop.f32.mrb[0].mxu0 }
  0xdb   :  { %v2234_v14 = vadd.f32 %v1693_v9, %v142_v12  ;;  %v1843_v15 = vpop.f32.mrb[2].mxu1  ;;  %v2236_v16 = vadd.f32 %v1838_v13, %v1693_v9  ;;  %v126_v17 = vpop.f32.mrb[1].mxu0 }
  0xdc   :  { %v2238_v18 = vadd.f32 %v1843_v15, %v1693_v9  ;;  %v145_v19 = vpop.f32.mrb[3].mxu1  ;;  %v1839_v20 = vpop.f32.mrb[2].mxu0  ;;  %v127_v24 = vadd.f32 %v1693_v9, %v126_v17 }
  0xdd   :  { %v2240_v21 = vadd.f32 %v1693_v9, %v145_v19  ;;  %v2242_v22 = vadd.f32 %v1839_v20, %v1693_v9  ;;  %v129_v23 = vpop.f32.mrb[3].mxu0 }
  0xde   :  { %v130_v25 = vadd.f32 %v1693_v9, %v129_v23 }
  0xe1   :  { %v211_v26 = vpop.f32.mrb[4].mxu1 }
  0xe2   :  { %v217_v27 = vadd.f32 %v211_v26, %v127_v24  ;;  %v1850_v28 = vpop.f32.mrb[5].mxu1 }
  0xe3   :  { %v214_v29 = vpop.f32.mrb[6].mxu1 }
  0xe4   :  { %v1705_v30 = vmul.f32 -1.442695, %v217_v27  ;;  %v1851_v31 = vpop.f32.mrb[7].mxu1 }
  0xe6   :  { %2017 = vpow2.f32 %v1705_v30 }
  0xf0   :  { %v2018_v32 = vpop.eup %2017 }
  0xf1   :  { %v221_v33 = vadd.f32 1.0, %v2018_v32 }
  0xf3   :  { %2019 = vrcp.f32 %v221_v33 }
  0xfd   :  { %v2020_v34 = vpop.eup %2019 }
  0xfe   :  { %v224_v35 = vmul.f32 2.0, %v2020_v34  ;;  %v226_v39 = vmul.f32 0.0, %v2020_v34 }
 0x100   :  { %v1706_v36 = vadd.f32 -1.0, %v224_v35 }
 0x102   :  { %228 = vrot.lane.b32.xlu0 %v1706_v36, %s2116_s3 }
 0x174   :  { %v229_v37 = vpop.permute.xlu0 %228 }
 0x175   :  { %v231_v38 = vmul.f32 %v2020_v34, %v229_v37 }
 0x177   :  { %233 = vrot.lane.b32.xlu0 %v231_v38, %s2117_s30 }
 0x1e9   :  { %v234_v40 = vpop.permute.xlu0 %233 }
 0x1ea   :  { %v236_v41 = vadd.f32 %v234_v40, %v226_v39 }
 0x1ec   :  { %2021 = vtanh.f32 %v236_v41 }
 0x1f6   :  { %v2022_v42 = vpop.eup %2021 }
 0x1f7   :  { %239 = vrot.lane.b32.xlu1 %v2022_v42, %s2116_s3 }
 0x269   :  { %v240_v43 = vpop.permute.xlu1 %239 }
 0x26a   :  { %v2247_v44 = vmul.f32 %v2020_v34, %v240_v43 }
 0x26c   :  { %v248_v45 = vpack.c.bf16 %v2247_v44, %v2247_v44 }
 0x26e   :  { %250 = vrot.lane.b32.xlu1 %v248_v45, %s2117_s30 }
 0x2e0   :  { %v251_v46 = vpop.permute.xlu1 %250 }
 0x2e1   :  { %1857 = vmatmul.mubr.msk.bf16.vlgmr.msra.gmra.mrb[8].mxu1 %vm173_vm2, %v251_v46 }
 0x2e2   :  { %1869 = vmatpush3.bf16.msra.mxu1 %v2192_v3  ;;  %1872 = vmatprep.mubr.msk.bf16.mxu1 %vm2114_vm1, %v2113_v4 }
 0x2e3   :  { %1870 = vmatprep.subr.bf16.mxu1 %v2113_v4 }
 0x2e6   :  { %1871 = vmatpush3.bf16.msra.mxu1 %v2209_v7 }
 0x2e7   :  { %1884 = vmatprep.subr.bf16.mxu1 %v2113_v4 }
 0x3b4   :  { %v289_v47 = vpop.f32.mrb[8].mxu1 }
 0x3b5   :  { %v295_v48 = vadd.f32 %v289_v47, %v130_v25  ;;  %v1858_v49 = vpop.f32.mrb[9].mxu1 }
 0x3b6   :  { %v292_v50 = vpop.f32.mrb[10].mxu1 }
 0x3b7   :  { %v1708_v51 = vmul.f32 -1.442695, %v295_v48  ;;  %v1859_v52 = vpop.f32.mrb[11].mxu1 }
 0x3b9   :  { %2023 = vpow2.f32 %v1708_v51 }
 0x3c3   :  { %v2024_v53 = vpop.eup %2023 }
 0x3c4   :  { %v299_v54 = vadd.f32 1.0, %v2024_v53 }
 0x3c6   :  { %2025 = vrcp.f32 %v299_v54 }
 0x3d0   :  { %v2026_v55 = vpop.eup %2025 }
 0x3d1   :  { %v302_v56 = vmul.f32 2.0, %v2026_v55  ;;  %v304_v60 = vmul.f32 %v2026_v55, %v236_v41 }
 0x3d3   :  { %v1709_v57 = vadd.f32 -1.0, %v302_v56 }
 0x3d5   :  { %306 = vrot.lane.b32.xlu0 %v1709_v57, %s2116_s3 }
 0x447   :  { %v307_v58 = vpop.permute.xlu0 %306 }
 0x448   :  { %v309_v59 = vmul.f32 %v2026_v55, %v307_v58 }
 0x44a   :  { %311 = vrot.lane.b32.xlu1 %v309_v59, %s2117_s30 }
 0x4bc   :  { %v312_v61 = vpop.permute.xlu1 %311 }
 0x4bd   :  { %v314_v62 = vadd.f32 %v312_v61, %v304_v60 }
 0x4bf   :  { %2027 = vtanh.f32 %v314_v62 }
 0x4c9   :  { %v2028_v63 = vpop.eup %2027 }
 0x4ca   :  { %317 = vrot.lane.b32.xlu0 %v2028_v63, %s2116_s3 }
 0x53c   :  { %v318_v0 = vpop.permute.xlu0 %317 }
 0x53d   :  { %v2262_v1 = vmul.f32 %v2026_v55, %v318_v0 }
 0x53f   :  { %v326_v2 = vpack.c.bf16 %v2262_v1, %v2262_v1 }
 0x541   :  { %328 = vrot.lane.b32.xlu1 %v326_v2, %s2117_s30 }
 0x5b3   :  { %v329_v5 = vpop.permute.xlu1 %328 }
 0x5b4   :  { %1865 = vmatmul.mubr.msk.bf16.vlgmr.msra.gmra.mrb[4].mxu0 %vm173_vm2, %v329_v5 }
 0x5b5   :  { %1877 = vmatpush3.bf16.msra.mxu0 %v2192_v3  ;;  %1880 = vmatprep.mubr.msk.bf16.mxu0 %vm2114_vm1, %v2113_v4 }
 0x5b6   :  { %1878 = vmatprep.subr.bf16.mxu0 %v2113_v4 }
 0x5b9   :  { %1879 = vmatpush3.bf16.msra.mxu0 %v2209_v7 }
 0x5ba   :  { %1892 = vmatprep.subr.bf16.mxu0 %v2113_v4 }
 0x687   :  { %v367_v6 = vpop.f32.mrb[4].mxu0 }
 0x688   :  { %v373_v9 = vadd.f32 %v367_v6, %v2236_v16  ;;  %v1866_v10 = vpop.f32.mrb[5].mxu0 }
 0x689   :  { %v370_v12 = vpop.f32.mrb[6].mxu0 }
 0x68a   :  { %v1711_v13 = vmul.f32 -1.442695, %v373_v9  ;;  %v1867_v15 = vpop.f32.mrb[7].mxu0 }
 0x68c   :  { %2029 = vpow2.f32 %v1711_v13 }
 0x696   :  { %v2030_v17 = vpop.eup %2029 }
 0x697   :  { %v377_v19 = vadd.f32 1.0, %v2030_v17 }
 0x699   :  { %2031 = vrcp.f32 %v377_v19 }
 0x6a3   :  { %v2032_v20 = vpop.eup %2031 }
 0x6a4   :  { %v380_v23 = vmul.f32 2.0, %v2032_v20  ;;  %v382_v27 = vmul.f32 %v2032_v20, %v314_v62 }
 0x6a6   :  { %v1712_v24 = vadd.f32 -1.0, %v380_v23 }
 0x6a8   :  { %384 = vrot.lane.b32.xlu0 %v1712_v24, %s2116_s3 }
 0x71a   :  { %v385_v25 = vpop.permute.xlu0 %384 }
 0x71b   :  { %v387_v26 = vmul.f32 %v2032_v20, %v385_v25 }
 0x71d   :  { %389 = vrot.lane.b32.xlu1 %v387_v26, %s2117_s30 }
 0x78f   :  { %v390_v28 = vpop.permute.xlu1 %389 }
 0x790   :  { %v392_v16 = vadd.f32 %v390_v28, %v382_v27 }
 0x792   :  { %2033 = vtanh.f32 %v392_v16 }
 0x79c   :  { %v2034_v29 = vpop.eup %2033 }
 0x79d   :  { %395 = vrot.lane.b32.xlu0 %v2034_v29, %s2116_s3 }
 0x80f   :  { %v396_v30 = vpop.permute.xlu0 %395 }
 0x810   :  { %v2278_v31 = vmul.f32 %v2032_v20, %v396_v30 }
 0x812   :  { %v404_v32 = vpack.c.bf16 %v2278_v31, %v2278_v31 }
 0x814   :  { %406 = vrot.lane.b32.xlu1 %v404_v32, %s2117_s30 }
 0x886   :  { %v407_v33 = vpop.permute.xlu1 %406 }
 0x887   :  { %1873 = vmatmul.mubr.msk.bf16.vlgmr.msra.gmra.mrb[12].mxu1 %vm173_vm2, %v407_v33 }
 0x888   :  { %1885 = vmatpush3.bf16.msra.mxu1 %v2192_v3  ;;  %1888 = vmatprep.mubr.msk.bf16.mxu1 %vm2114_vm1, %v2113_v4 }
 0x889   :  { %1886 = vmatprep.subr.bf16.mxu1 %v2113_v4 }
 0x88c   :  { %1887 = vmatpush3.bf16.msra.mxu1 %v2209_v7 }
 0x88d   :  { %1900 = vmatprep.subr.bf16.mxu1 %v2113_v4 }
 0x95a   :  { %v445_v34 = vpop.f32.mrb[12].mxu1 }
 0x95b   :  { %v451_v35 = vadd.f32 %v445_v34, %v2242_v22  ;;  %v1874_v36 = vpop.f32.mrb[13].mxu1 }
 0x95c   :  { %v448_v37 = vpop.f32.mrb[14].mxu1 }
 0x95d   :  { %v1714_v38 = vmul.f32 -1.442695, %v451_v35  ;;  %v1875_v39 = vpop.f32.mrb[15].mxu1 }
 0x95f   :  { %2035 = vpow2.f32 %v1714_v38 }
 0x969   :  { %v2036_v40 = vpop.eup %2035 }
 0x96a   :  { %v455_v41 = vadd.f32 1.0, %v2036_v40 }
 0x96c   :  { %2037 = vrcp.f32 %v455_v41 }
 0x976   :  { %v2038_v42 = vpop.eup %2037 }
 0x977   :  { %v458_v43 = vmul.f32 2.0, %v2038_v42  ;;  %v460_v48 = vmul.f32 %v2038_v42, %v392_v16 }
 0x979   :  { %v1715_v45 = vadd.f32 -1.0, %v458_v43 }
 0x97b   :  { %462 = vrot.lane.b32.xlu0 %v1715_v45, %s2116_s3 }
 0x9ed   :  { %v463_v46 = vpop.permute.xlu0 %462 }
 0x9ee   :  { %v465_v47 = vmul.f32 %v2038_v42, %v463_v46 }
 0x9f0   :  { %467 = vrot.lane.b32.xlu1 %v465_v47, %s2117_s30 }
 0xa62   :  { %v468_v49 = vpop.permute.xlu1 %467 }
 0xa63   :  { %v470_v22 = vadd.f32 %v468_v49, %v460_v48 }
 0xa65   :  { %2039 = vtanh.f32 %v470_v22 }
 0xa6f   :  { %v2040_v50 = vpop.eup %2039 }
 0xa70   :  { %473 = vrot.lane.b32.xlu0 %v2040_v50, %s2116_s3 }
 0xae2   :  { %v474_v51 = vpop.permute.xlu0 %473 }
 0xae3   :  { %v2294_v52 = vmul.f32 %v2038_v42, %v474_v51 }
 0xae5   :  { %v482_v53 = vpack.c.bf16 %v2294_v52, %v2294_v52 }
 0xae7   :  { %484 = vrot.lane.b32.xlu1 %v482_v53, %s2117_s30 }
 0xb59   :  { %v485_v54 = vpop.permute.xlu1 %484 }
 0xb5a   :  { %1881 = vmatmul.mubr.msk.bf16.vlgmr.msra.gmra.mrb[8].mxu0 %vm173_vm2, %v485_v54 }
 0xb5b   :  { %1893 = vmatpush3.bf16.msra.mxu0 %v2192_v3  ;;  %1896 = vmatprep.mubr.msk.bf16.mxu0 %vm2114_vm1, %v2113_v4 }
 0xb5c   :  { %1894 = vmatprep.subr.bf16.mxu0 %v2113_v4 }
 0xb5f   :  { %1895 = vmatpush3.bf16.msra.mxu0 %v2209_v7 }
 0xc2d   :  { %v523_v55 = vpop.f32.mrb[8].mxu0 }
 0xc2e   :  { %v529_v56 = vadd.f32 %v523_v55, %v2234_v14  ;;  %v1882_v57 = vpop.f32.mrb[9].mxu0 }
 0xc2f   :  { %v526_v58 = vpop.f32.mrb[10].mxu0 }
 0xc30   :  { %v1717_v59 = vmul.f32 -1.442695, %v529_v56  ;;  %v1883_v60 = vpop.f32.mrb[11].mxu0  ;;  %v2011_v58 = vld [vmem:[%s2621_s4] sm:$0xff]  }
 0xc31   :  { %1908 = vmatprep.subr.bf16.mxu0 %v2011_v58 }
 0xc32   :  { %2041 = vpow2.f32 %v1717_v59 }
 0xc3c   :  { %v2042_v61 = vpop.eup %2041 }
 0xc3d   :  { %v533_v62 = vadd.f32 1.0, %v2042_v61 }
 0xc3f   :  { %2043 = vrcp.f32 %v533_v62 }
 0xc49   :  { %v2044_v63 = vpop.eup %2043 }
 0xc4a   :  { %v536_v0 = vmul.f32 2.0, %v2044_v63  ;;  %v538_v9 = vmul.f32 %v2044_v63, %v470_v22 }
 0xc4c   :  { %v1718_v2 = vadd.f32 -1.0, %v536_v0 }
 0xc4e   :  { %540 = vrot.lane.b32.xlu0 %v1718_v2, %s2116_s3 }
 0xcc0   :  { %v541_v5 = vpop.permute.xlu0 %540 }
 0xcc1   :  { %v543_v6 = vmul.f32 %v2044_v63, %v541_v5 }
 0xcc3   :  { %545 = vrot.lane.b32.xlu1 %v543_v6, %s2117_s30 }
 0xd35   :  { %v546_v10 = vpop.permute.xlu1 %545 }
 0xd36   :  { %v548_v14 = vadd.f32 %v546_v10, %v538_v9  ;;  %v2366_v9 = vld [vmem:[%s2622_s5] sm:$0xff]   ;;  %v2374_v10 = vld [vmem:[%s2622_s5 + $0x8] sm:$0xff]  }
 0xd38   :  { %2045 = vtanh.f32 %v548_v14 }
 0xd42   :  { %v2046_v12 = vpop.eup %2045 }
 0xd43   :  { %551 = vrot.lane.b32.xlu0 %v2046_v12, %s2116_s3 }
 0xdb5   :  { %v552_v13 = vpop.permute.xlu0 %551 }
 0xdb6   :  { %v2309_v15 = vmul.f32 %v2044_v63, %v552_v13 }
 0xdb8   :  { %v560_v17 = vpack.c.bf16 %v2309_v15, %v2309_v15 }
 0xdba   :  { %562 = vrot.lane.b32.xlu1 %v560_v17, %s2117_s30 }
 0xe2c   :  { %v563_v19 = vpop.permute.xlu1 %562 }
 0xe2d   :  { %1889 = vmatmul.mubr.msk.bf16.vlgmr.msra.gmra.mrb[16].mxu1 %vm173_vm2, %v563_v19 }
 0xe2e   :  { %1901 = vmatpush3.bf16.msra.mxu1 %v2192_v3  ;;  %1904 = vmatprep.mubr.msk.bf16.mxu1 %vm2114_vm1, %v2113_v4 }
 0xe2f   :  { %1902 = vmatprep.subr.bf16.mxu1 %v2113_v4 }
 0xe32   :  { %1903 = vmatpush3.bf16.msra.mxu1 %v2209_v7 }
 0xe33   :  { %1920 = vmatprep.subr.bf16.mxu1 %v2113_v4 }
 0xf00   :  { %v601_v20 = vpop.f32.mrb[16].mxu1 }
 0xf01   :  { %v607_v23 = vadd.f32 %v601_v20, %v2240_v21  ;;  %v1890_v24 = vpop.f32.mrb[17].mxu1 }
 0xf02   :  { %v604_v25 = vpop.f32.mrb[18].mxu1 }
 0xf03   :  { %v1720_v26 = vmul.f32 -1.442695, %v607_v23  ;;  %v1891_v27 = vpop.f32.mrb[19].mxu1 }
 0xf05   :  { %2047 = vpow2.f32 %v1720_v26  ;;  %v2402_v26 = vld [vmem:[%s2623_s6] ss:$0 sm:$0xff] }
 0xf0f   :  { %v2048_v28 = vpop.eup %2047 }
 0xf10   :  { %v611_v16 = vadd.f32 1.0, %v2048_v28 }
 0xf12   :  { %2049 = vrcp.f32 %v611_v16 }
 0xf1c   :  { %v2050_v3 = vpop.eup %2049 }
 0xf1d   :  { %v614_v29 = vmul.f32 2.0, %v2050_v3  ;;  %v616_v33 = vmul.f32 %v2050_v3, %v548_v14 }
 0xf1f   :  { %v1721_v30 = vadd.f32 -1.0, %v614_v29 }
 0xf21   :  { %618 = vrot.lane.b32.xlu0 %v1721_v30, %s2116_s3 }
 0xf93   :  { %v619_v32 = vpop.permute.xlu0 %618 }
 0xf94   :  { %v621_v7 = vmul.f32 %v2050_v3, %v619_v32 }
 0xf96   :  { %623 = vrot.lane.b32.xlu1 %v621_v7, %s2117_s30 }
0x1008   :  { %v624_v34 = vpop.permute.xlu1 %623 }
0x1009   :  { %v626_v21 = vadd.f32 %v624_v34, %v616_v33 }
0x100b   :  { %2051 = vtanh.f32 %v626_v21 }
0x1015   :  { %v2052_v35 = vpop.eup %2051 }
0x1016   :  { %629 = vrot.lane.b32.xlu0 %v2052_v35, %s2116_s3 }
0x1088   :  { %v630_v36 = vpop.permute.xlu0 %629 }
0x1089   :  { %v2325_v37 = vmul.f32 %v2050_v3, %v630_v36 }
0x108b   :  { %v638_v38 = vpack.c.bf16 %v2325_v37, %v2325_v37 }
0x108d   :  { %640 = vrot.lane.b32.xlu1 %v638_v38, %s2117_s30 }
0x10ff   :  { %v641_v39 = vpop.permute.xlu1 %640 }
0x1100   :  { %1897 = vmatmul.mubr.msk.bf16.vlgmr.msra.gmra.mrb[12].mxu0 %vm173_vm2, %v641_v39 }
0x1101   :  { %1909 = vmatpush3.bf16.msra.mxu0 %v2011_v58 }
0x11d3   :  { %v679_v40 = vpop.f32.mrb[12].mxu0 }
0x11d4   :  { %v685_v41 = vadd.f32 %v679_v40, %v2232_v11  ;;  %v1898_v42 = vpop.f32.mrb[13].mxu0 }
0x11d5   :  { %v682_v43 = vpop.f32.mrb[14].mxu0 }
0x11d6   :  { %v1723_v45 = vmul.f32 -1.442695, %v685_v41  ;;  %v1899_v46 = vpop.f32.mrb[15].mxu0 }
0x11d8   :  { %2053 = vpow2.f32 %v1723_v45 }
0x11e2   :  { %v2054_v47 = vpop.eup %2053 }
0x11e3   :  { %v689_v48 = vadd.f32 1.0, %v2054_v47 }
0x11e5   :  { %2055 = vrcp.f32 %v689_v48 }
0x11ef   :  { %v2056_v49 = vpop.eup %2055 }
0x11f0   :  { %v692_v22 = vmul.f32 2.0, %v2056_v49  ;;  %v694_v11 = vmul.f32 %v2056_v49, %v626_v21 }
0x11f2   :  { %v1724_v50 = vadd.f32 -1.0, %v692_v22 }
0x11f4   :  { %696 = vrot.lane.b32.xlu0 %v1724_v50, %s2116_s3 }
0x1266   :  { %v697_v51 = vpop.permute.xlu0 %696 }
0x1267   :  { %v699_v53 = vmul.f32 %v2056_v49, %v697_v51 }
0x1269   :  { %701 = vrot.lane.b32.xlu1 %v699_v53, %s2117_s30 }
0x126d   :  { %244 = vrot.lane.b32.xlu1 %v2247_v44, %s2117_s30  ;;  %v2012_v44 = vld [vmem:[%s2621_s4 + $0x8] sm:$0xff]  }
0x126e   :  { %1910 = vmatprep.subr.bf16.mxu0 %v2012_v44 }
0x126f   :  { %1911 = vmatpush3.bf16.msra.mxu0 %v2012_v44 }
0x1270   :  { %1936 = vmatprep.subr.bf16.mxu0 %v2113_v4 }
0x1271   :  { %400 = vrot.lane.b32.xlu1 %v2278_v31, %s2117_s30 }
0x12db   :  { %v702_v54 = vpop.permute.xlu1 %701 }
0x12dc   :  { %v2338_v55 = vadd.f32 %v702_v54, %v694_v11 }
0x12de   :  { %2057 = vtanh.f32 %v2338_v55 }
0x12df   :  { %v245_v56 = vpop.permute.xlu1 %244 }
0x12e0   :  { %247 = vst.msk [vmem:[#allocation2] sm:$0xff] %vm173_vm2, %v245_v56 }
0x12e3   :  { %v401_v57 = vpop.permute.xlu1 %400 }
0x12e4   :  { %403 = vst.msk [vmem:[#allocation2 + $0x10] sm:$0xff] %vm173_vm2, %v401_v57 }
0x12e7   :  { %v800_v0 = vld [vmem:[#allocation2] sm:$0xff] }
0x12e8   :  { %v2058_v31 = vpop.eup %2057 }
0x12e9   :  { %707 = vrot.lane.b32.xlu0 %v2058_v31, %s2116_s3 }
0x12ed   :  { %322 = vrot.lane.b32.xlu0 %v2262_v1, %s2117_s30 }
0x12f1   :  { %478 = vrot.lane.b32.xlu0 %v2294_v52, %s2117_s30  ;;  %v802_v52 = vld [vmem:[#allocation2 + $0x10] sm:$0xff] }
0x135b   :  { %v708_v59 = vpop.permute.xlu0 %707 }
0x135c   :  { %v2355_v60 = vmul.f32 %v2056_v49, %v708_v59 }
0x135e   :  { %v716_v61 = vpack.c.bf16 %v2355_v60, %v2355_v60 }
0x135f   :  { %v323_v62 = vpop.permute.xlu0 %322 }
0x1360   :  { %325 = vst.msk [vmem:[#allocation2 + $0x8] sm:$0xff] %vm173_vm2, %v323_v62  ;;  %718 = vrot.lane.b32.xlu1 %v716_v61, %s2117_s30 }
0x1363   :  { %v479_v63 = vpop.permute.xlu0 %478 }
0x1364   :  { %481 = vst.msk [vmem:[#allocation2 + $0x18] sm:$0xff] %vm173_vm2, %v479_v63 }
0x1367   :  { %v801_v2 = vld [vmem:[#allocation2 + $0x8] sm:$0xff] }
0x1368   :  { %v808_v1 = vpack.c.bf16 %v801_v2, %v800_v0 }
0x136a   :  { %1912 = vmatprep.mubr.msk.bf16.mxu0 %vm173_vm2, %v808_v1 }
0x136b   :  { %v803_v5 = vld [vmem:[#allocation2 + $0x18] sm:$0xff] }
0x136c   :  { %v809_v6 = vpack.c.bf16 %v803_v5, %v802_v52 }
0x136e   :  { %1913 = vmatmul.mubr.msk.bf16.vlgmr.msra.gmra.mrb[16].mxu0 %vm173_vm2, %v809_v6 }
0x136f   :  { %1937 = vmatpush3.bf16.msra.mxu0 %v2366_v9 }
0x1370   :  { %1938 = vmatprep.subr.bf16.mxu0 %v2113_v4 }
0x1373   :  { %1939 = vmatpush3.bf16.msra.mxu0 %v2374_v10 }
0x1374   :  { %1952 = vmatprep.subr.bf16.mxu0 %v2113_v4 }
0x13d2   :  { %v719_v14 = vpop.permute.xlu1 %718 }
0x13d3   :  { %1905 = vmatmul.mubr.msk.bf16.vlgmr.msra.gmra.mrb[20].mxu1 %vm173_vm2, %v719_v14 }
0x13d4   :  { %1921 = vmatpush3.bf16.msra.mxu1 %v2366_v9  ;;  %1924 = vmatprep.mubr.msk.bf16.mxu1 %vm2114_vm1, %v2113_v4 }
0x13d5   :  { %1922 = vmatprep.subr.bf16.mxu1 %v2113_v4 }
0x13d8   :  { %1923 = vmatpush3.bf16.msra.mxu1 %v2374_v10 }
0x13d9   :  { %1928 = vmatprep.subr.bf16.mxu1 %v2113_v4 }
0x13db   :  { %1925 = vmatmul.mubr.bf16.vlgmr.msra.gmra.mrb[24].mxu1 %v2115_v8 }
0x13dc   :  { %1929 = vmatpush3.bf16.msra.mxu1 %v2366_v9  ;;  %1932 = vmatprep.mubr.msk.bf16.mxu1 %vm2114_vm1, %v2113_v4 }
0x13dd   :  { %1930 = vmatprep.subr.bf16.mxu1 %v2113_v4 }
0x13e0   :  { %1931 = vmatpush3.bf16.msra.mxu1 %v2374_v10 }
0x13e1   :  { %1944 = vmatprep.subr.bf16.mxu1 %v2113_v4 }
0x1441   :  { %v2392_v12 = vpop.f32.mrb[16].mxu0 }
0x1442   :  { %v881_v13 = vpop.f32.mrb[17].mxu0 }
0x1443   :  { %v2394_v17 = vpop.f32.mrb[18].mxu0  ;;  %v882_v27 = vadd.f32 %v2402_v26, %v881_v13 }
0x1444   :  { %v2396_v19 = vpop.f32.mrb[19].mxu0 }
0x1445   :  { %v885_v59 = vadd.f32 %v2402_v26, %v2396_v19 }
0x14a6   :  { %v757_v20 = vpop.f32.mrb[20].mxu1 }
0x14a7   :  { %v763_v8 = vadd.f32 %v757_v20, %v2238_v18  ;;  %v1906_v23 = vpop.f32.mrb[21].mxu1 }
0x14a8   :  { %v760_v24 = vpop.f32.mrb[22].mxu1 }
0x14a9   :  { %v1907_v25 = vpop.f32.mrb[23].mxu1  ;;  %v1726_v38 = vmul.f32 -1.442695, %v763_v8 }
0x14ae   :  { %v962_v28 = vpop.f32.mrb[24].mxu1 }
0x14af   :  { %v968_v16 = vadd.f32 %v962_v28, %v882_v27  ;;  %v1926_v3 = vpop.f32.mrb[25].mxu1 }
0x14b0   :  { %v965_v29 = vpop.f32.mrb[26].mxu1 }
0x14b1   :  { %v1737_v30 = vmul.f32 -1.442695, %v968_v16  ;;  %v1927_v32 = vpop.f32.mrb[27].mxu1 }
0x14b3   :  { %2059 = vpow2.f32 %v1737_v30 }
0x14bd   :  { %v2060_v7 = vpop.eup %2059 }
0x14be   :  { %v972_v33 = vadd.f32 1.0, %v2060_v7 }
0x14c0   :  { %2061 = vrcp.f32 %v972_v33 }
0x14c1   :  { %2063 = vpow2.f32 %v1726_v38  ;;  %v890_v38 = vadd.f32 %v2392_v12, %v2402_v26 }
0x14ca   :  { %v2062_v18 = vpop.eup %2061 }
0x14cb   :  { %v975_v34 = vmul.f32 2.0, %v2062_v18  ;;  %v2064_v39 = vpop.eup %2063  ;;  %v977_v41 = vmul.f32 0.0, %v2062_v18 }
0x14cc   :  { %v767_v40 = vadd.f32 1.0, %v2064_v39 }
0x14cd   :  { %v1738_v21 = vadd.f32 -1.0, %v975_v34 }
0x14ce   :  { %2065 = vrcp.f32 %v767_v40 }
0x14cf   :  { %979 = vrot.lane.b32.xlu0 %v1738_v21, %s2116_s3 }
0x14d8   :  { %v2066_v45 = vpop.eup %2065 }
0x14d9   :  { %v770_v46 = vmul.f32 2.0, %v2066_v45  ;;  %v772_v54 = vmul.f32 %v2066_v45, %v2338_v55 }
0x14db   :  { %v1727_v48 = vadd.f32 -1.0, %v770_v46 }
0x1541   :  { %v980_v35 = vpop.permute.xlu0 %979 }
0x1542   :  { %v982_v36 = vmul.f32 %v2062_v18, %v980_v35 }
0x1544   :  { %984 = vrot.lane.b32.xlu1 %v982_v36, %s2117_s30 }
0x15b6   :  { %v985_v42 = vpop.permute.xlu1 %984 }
0x15b7   :  { %v987_v43 = vadd.f32 %v985_v42, %v977_v41 }
0x15b9   :  { %2067 = vtanh.f32 %v987_v43 }
0x15c3   :  { %v2068_v47 = vpop.eup %2067 }
0x15c4   :  { %990 = vrot.lane.b32.xlu0 %v2068_v47, %s2116_s3 }
0x15c8   :  { %774 = vrot.lane.b32.xlu0 %v1727_v48, %s2116_s3 }
0x1636   :  { %v991_v49 = vpop.permute.xlu0 %990 }
0x1637   :  { %v2409_v22 = vmul.f32 %v2062_v18, %v991_v49 }
0x1639   :  { %v999_v50 = vpack.c.bf16 %v2409_v22, %v2409_v22 }
0x163a   :  { %v775_v51 = vpop.permute.xlu0 %774 }
0x163b   :  { %v777_v53 = vmul.f32 %v2066_v45, %v775_v51  ;;  %1001 = vrot.lane.b32.xlu1 %v999_v50, %s2117_s30 }
0x163d   :  { %779 = vrot.lane.b32.xlu0 %v777_v53, %s2117_s30 }
0x16ad   :  { %v1002_v11 = vpop.permute.xlu1 %1001 }
0x16ae   :  { %1933 = vmatmul.mubr.msk.bf16.vlgmr.msra.gmra.mrb[28].mxu1 %vm173_vm2, %v1002_v11 }
0x16af   :  { %v780_v56 = vpop.permute.xlu0 %779  ;;  %1945 = vmatpush3.bf16.msra.mxu1 %v2366_v9  ;;  %1948 = vmatprep.mubr.msk.bf16.mxu1 %vm2114_vm1, %v2113_v4 }
0x16b0   :  { %v2420_v57 = vadd.f32 %v780_v56, %v772_v54  ;;  %1946 = vmatprep.subr.bf16.mxu1 %v2113_v4 }
0x16b2   :  { %2069 = vtanh.f32 %v2420_v57 }
0x16b3   :  { %1947 = vmatpush3.bf16.msra.mxu1 %v2374_v10 }
0x16b4   :  { %1960 = vmatprep.subr.bf16.mxu1 %v2113_v4 }
0x16bc   :  { %v2070_v58 = vpop.eup %2069 }
0x16bd   :  { %785 = vrot.lane.b32.xlu0 %v2070_v58, %s2116_s3 }
0x16c1   :  { %556 = vrot.lane.b32.xlu0 %v2309_v15, %s2117_s30 }
0x16c5   :  { %712 = vrot.lane.b32.xlu0 %v2355_v60, %s2117_s30 }
0x172f   :  { %v786_v55 = vpop.permute.xlu0 %785 }
0x1730   :  { %v788_v24 = vmul.f32 %v2066_v45, %v786_v55 }
0x1733   :  { %v557_v44 = vpop.permute.xlu0 %556 }
0x1734   :  { %559 = vst.msk [vmem:[#allocation2 + $0x20] sm:$0xff] %vm173_vm2, %v557_v44 }
0x1737   :  { %v713_v31 = vpop.permute.xlu0 %712 }
0x1738   :  { %715 = vst.msk [vmem:[#allocation2 + $0x30] sm:$0xff] %vm173_vm2, %v713_v31 }
0x173f   :  { %v806_v32 = vld [vmem:[#allocation2 + $0x30] sm:$0xff] }
0x1781   :  { %v1040_v61 = vpop.f32.mrb[28].mxu1 }
0x1782   :  { %v1046_v62 = vadd.f32 %v1040_v61, %v885_v59  ;;  %v1934_v63 = vpop.f32.mrb[29].mxu1  ;;  %v893_v59 = vadd.f32 %v2394_v17, %v2402_v26 }
0x1783   :  { %v1043_v0 = vpop.f32.mrb[30].mxu1 }
0x1784   :  { %v1740_v2 = vmul.f32 -1.442695, %v1046_v62  ;;  %v1935_v1 = vpop.f32.mrb[31].mxu1 }
0x1786   :  { %2071 = vpow2.f32 %v1740_v2 }
0x1790   :  { %v2072_v15 = vpop.eup %2071 }
0x1791   :  { %v1050_v52 = vadd.f32 1.0, %v2072_v15 }
0x1793   :  { %2073 = vrcp.f32 %v1050_v52 }
0x179d   :  { %v2074_v60 = vpop.eup %2073 }
0x179e   :  { %v1053_v5 = vmul.f32 2.0, %v2074_v60  ;;  %v1055_v19 = vmul.f32 %v2074_v60, %v987_v43 }
0x17a0   :  { %v1741_v6 = vadd.f32 -1.0, %v1053_v5 }
0x17a2   :  { %1057 = vrot.lane.b32.xlu1 %v1741_v6, %s2116_s3 }
0x1814   :  { %v1058_v14 = vpop.permute.xlu1 %1057 }
0x1815   :  { %v1060_v13 = vmul.f32 %v2074_v60, %v1058_v14 }
0x1817   :  { %1062 = vrot.lane.b32.xlu1 %v1060_v13, %s2117_s30 }
0x1889   :  { %v1063_v20 = vpop.permute.xlu1 %1062 }
0x188a   :  { %v1065_v8 = vadd.f32 %v1063_v20, %v1055_v19 }
0x188c   :  { %2075 = vtanh.f32 %v1065_v8 }
0x1896   :  { %v2076_v23 = vpop.eup %2075 }
0x1897   :  { %1068 = vrot.lane.b32.xlu1 %v2076_v23, %s2116_s3 }
0x189b   :  { %634 = vrot.lane.b32.xlu1 %v2325_v37, %s2117_s30  ;;  %v804_v37 = vld [vmem:[#allocation2 + $0x20] sm:$0xff] }
0x189f   :  { %790 = vrot.lane.b32.xlu1 %v788_v24, %s2117_s30 }
0x1909   :  { %v1069_v25 = vpop.permute.xlu1 %1068 }
0x190a   :  { %v2441_v27 = vmul.f32 %v2074_v60, %v1069_v25 }
0x190c   :  { %v1077_v28 = vpack.c.bf16 %v2441_v27, %v2441_v27 }
0x190d   :  { %v635_v16 = vpop.permute.xlu1 %634 }
0x190e   :  { %637 = vst.msk [vmem:[#allocation2 + $0x28] sm:$0xff] %vm173_vm2, %v635_v16  ;;  %1079 = vrot.lane.b32.xlu0 %v1077_v28, %s2117_s30 }
0x1911   :  { %v791_v3 = vpop.permute.xlu1 %790 }
0x1912   :  { %793 = vst.msk [vmem:[#allocation2 + $0x38] sm:$0xff] %vm173_vm2, %v791_v3  ;;  %794 = vst.msk [vmem:[%s2624_s10] sm:$0xff] %vm173_vm2, %v791_v3 }
0x1915   :  { %v805_v29 = vld [vmem:[#allocation2 + $0x28] sm:$0xff] }
0x1916   :  { %v810_v30 = vpack.c.bf16 %v805_v29, %v804_v37 }
0x1918   :  { %1916 = vmatprep.mubr.msk.bf16.mxu0 %vm173_vm2, %v810_v30 }
0x1919   :  { %v807_v7 = vld [vmem:[#allocation2 + $0x38] sm:$0xff] }
0x191a   :  { %v811_v33 = vpack.c.bf16 %v807_v7, %v806_v32 }
0x191c   :  { %1917 = vmatmul.mubr.msk.bf16.gmra.mrb[20].mxu0 %vm173_vm2, %v811_v33 }
0x191d   :  { %1940 = vmatprep.mubr.msk.bf16.mxu0 %vm2114_vm1, %v2113_v4 }
0x1980   :  { %v1080_v18 = vpop.permute.xlu0 %1079 }
0x1981   :  { %1941 = vmatmul.mubr.msk.bf16.vlgmr.msra.gmra.mrb[24].mxu0 %vm173_vm2, %v1080_v18 }
0x1982   :  { %1953 = vmatpush3.bf16.msra.mxu0 %v2366_v9  ;;  %1956 = vmatprep.mubr.msk.bf16.mxu0 %vm2114_vm1, %v2113_v4 }
0x1983   :  { %1954 = vmatprep.subr.bf16.mxu0 %v2113_v4 }
0x1986   :  { %1955 = vmatpush3.bf16.msra.mxu0 %v2374_v10 }
0x1987   :  { %1968 = vmatprep.subr.bf16.mxu0 %v2113_v4 }
0x19ef   :  { %v2463_v34 = vpop.f32.mrb[20].mxu0 }
0x19f0   :  { %v2465_v21 = vpop.f32.mrb[21].mxu0 }
0x19f1   :  { %v2467_v35 = vpop.f32.mrb[22].mxu0  ;;  %v898_v16 = vadd.f32 %v2402_v26, %v2465_v21 }
0x19f2   :  { %v2469_v36 = vpop.f32.mrb[23].mxu0 }
0x1a54   :  { %v1118_v39 = vpop.f32.mrb[24].mxu0 }
0x1a55   :  { %v1124_v40 = vadd.f32 %v1118_v39, %v890_v38  ;;  %v1942_v41 = vpop.f32.mrb[25].mxu0 }
0x1a56   :  { %v1121_v42 = vpop.f32.mrb[26].mxu0 }
0x1a57   :  { %v1743_v43 = vmul.f32 -1.442695, %v1124_v40  ;;  %v1943_v45 = vpop.f32.mrb[27].mxu0 }
0x1a59   :  { %2077 = vpow2.f32 %v1743_v43 }
0x1a63   :  { %v2078_v46 = vpop.eup %2077 }
0x1a64   :  { %v1128_v47 = vadd.f32 1.0, %v2078_v46 }
0x1a66   :  { %2079 = vrcp.f32 %v1128_v47 }
0x1a70   :  { %v2080_v48 = vpop.eup %2079 }
0x1a71   :  { %v1131_v49 = vmul.f32 2.0, %v2080_v48  ;;  %v1133_v12 = vmul.f32 %v2080_v48, %v1065_v8 }
0x1a73   :  { %v1744_v50 = vadd.f32 -1.0, %v1131_v49 }
0x1a75   :  { %1135 = vrot.lane.b32.xlu1 %v1744_v50, %s2116_s3 }
0x1ae7   :  { %v1136_v51 = vpop.permute.xlu1 %1135 }
0x1ae8   :  { %v1138_v53 = vmul.f32 %v2080_v48, %v1136_v51  ;;  %v901_v51 = vadd.f32 %v2402_v26, %v2469_v36 }
0x1aea   :  { %1140 = vrot.lane.b32.xlu0 %v1138_v53, %s2117_s30 }
0x1b5c   :  { %v1141_v11 = vpop.permute.xlu0 %1140 }
0x1b5d   :  { %v1143_v54 = vadd.f32 %v1141_v11, %v1133_v12 }
0x1b5f   :  { %2081 = vtanh.f32 %v1143_v54 }
0x1b69   :  { %v2082_v56 = vpop.eup %2081 }
0x1b6a   :  { %1146 = vrot.lane.b32.xlu1 %v2082_v56, %s2116_s3 }
0x1bdc   :  { %v1147_v58 = vpop.permute.xlu1 %1146 }
0x1bdd   :  { %v2476_v55 = vmul.f32 %v2080_v48, %v1147_v58 }
0x1bdf   :  { %v1155_v44 = vpack.c.bf16 %v2476_v55, %v2476_v55 }
0x1be1   :  { %1157 = vrot.lane.b32.xlu0 %v1155_v44, %s2117_s30 }
0x1c53   :  { %v1158_v31 = vpop.permute.xlu0 %1157 }
0x1c54   :  { %1949 = vmatmul.mubr.msk.bf16.vlgmr.msra.gmra.mrb[32].mxu1 %vm173_vm2, %v1158_v31 }
0x1c55   :  { %1961 = vmatpush3.bf16.msra.mxu1 %v2366_v9  ;;  %1964 = vmatprep.mubr.msk.bf16.mxu1 %vm2114_vm1, %v2113_v4 }
0x1c56   :  { %1962 = vmatprep.subr.bf16.mxu1 %v2113_v4 }
0x1c59   :  { %1963 = vmatpush3.bf16.msra.mxu1 %v2374_v10 }
0x1c5a   :  { %1976 = vmatprep.subr.bf16.mxu1 %v2113_v4 }
0x1d27   :  { %v1196_v61 = vpop.f32.mrb[32].mxu1 }
0x1d28   :  { %v1202_v62 = vadd.f32 %v1196_v61, %v893_v59  ;;  %v1950_v63 = vpop.f32.mrb[33].mxu1 }
0x1d29   :  { %v1199_v0 = vpop.f32.mrb[34].mxu1 }
0x1d2a   :  { %v1746_v2 = vmul.f32 -1.442695, %v1202_v62  ;;  %v1951_v1 = vpop.f32.mrb[35].mxu1 }
0x1d2c   :  { %2083 = vpow2.f32 %v1746_v2 }
0x1d36   :  { %v2084_v15 = vpop.eup %2083 }
0x1d37   :  { %v1206_v52 = vadd.f32 1.0, %v2084_v15 }
0x1d39   :  { %2085 = vrcp.f32 %v1206_v52 }
0x1d43   :  { %v2086_v60 = vpop.eup %2085 }
0x1d44   :  { %v1209_v5 = vmul.f32 2.0, %v2086_v60  ;;  %v1211_v17 = vmul.f32 %v2086_v60, %v1143_v54 }
0x1d46   :  { %v1747_v6 = vadd.f32 -1.0, %v1209_v5 }
0x1d48   :  { %1213 = vrot.lane.b32.xlu1 %v1747_v6, %s2116_s3 }
0x1dba   :  { %v1214_v14 = vpop.permute.xlu1 %1213 }
0x1dbb   :  { %v1216_v13 = vmul.f32 %v2086_v60, %v1214_v14 }
0x1dbd   :  { %1218 = vrot.lane.b32.xlu0 %v1216_v13, %s2117_s30 }
0x1e2f   :  { %v1219_v19 = vpop.permute.xlu0 %1218 }
0x1e30   :  { %v1221_v20 = vadd.f32 %v1219_v19, %v1211_v17 }
0x1e32   :  { %2087 = vtanh.f32 %v1221_v20 }
0x1e3c   :  { %v2088_v8 = vpop.eup %2087 }
0x1e3d   :  { %1224 = vrot.lane.b32.xlu1 %v2088_v8, %s2116_s3 }
0x1eaf   :  { %v1225_v23 = vpop.permute.xlu1 %1224 }
0x1eb0   :  { %v2493_v24 = vmul.f32 %v2086_v60, %v1225_v23  ;;  %v906_v60 = vadd.f32 %v2463_v34, %v2402_v26 }
0x1eb2   :  { %v1233_v25 = vpack.c.bf16 %v2493_v24, %v2493_v24 }
0x1eb4   :  { %1235 = vrot.lane.b32.xlu0 %v1233_v25, %s2117_s30 }
0x1f26   :  { %v1236_v28 = vpop.permute.xlu0 %1235 }
0x1f27   :  { %1957 = vmatmul.mubr.msk.bf16.vlgmr.msra.gmra.mrb[28].mxu0 %vm173_vm2, %v1236_v28 }
0x1f28   :  { %1969 = vmatpush3.bf16.msra.mxu0 %v2366_v9  ;;  %1972 = vmatprep.mubr.msk.bf16.mxu0 %vm2114_vm1, %v2113_v4 }
0x1f29   :  { %1970 = vmatprep.subr.bf16.mxu0 %v2113_v4 }
0x1f2c   :  { %1971 = vmatpush3.bf16.msra.mxu0 %v2374_v10 }
0x1ffa   :  { %v1274_v3 = vpop.f32.mrb[28].mxu0 }
0x1ffb   :  { %v1280_v37 = vadd.f32 %v1274_v3, %v898_v16  ;;  %v1958_v29 = vpop.f32.mrb[29].mxu0 }
0x1ffc   :  { %v1277_v30 = vpop.f32.mrb[30].mxu0 }
0x1ffd   :  { %v1749_v32 = vmul.f32 -1.442695, %v1280_v37  ;;  %v1959_v7 = vpop.f32.mrb[31].mxu0 }
0x1fff   :  { %2089 = vpow2.f32 %v1749_v32 }
0x2009   :  { %v2090_v33 = vpop.eup %2089 }
0x200a   :  { %v1284_v18 = vadd.f32 1.0, %v2090_v33 }
0x200c   :  { %2091 = vrcp.f32 %v1284_v18 }
0x2016   :  { %v2092_v38 = vpop.eup %2091 }
0x2017   :  { %v1287_v39 = vmul.f32 2.0, %v2092_v38  ;;  %v1289_v21 = vmul.f32 %v2092_v38, %v1221_v20 }
0x2019   :  { %v1750_v40 = vadd.f32 -1.0, %v1287_v39 }
0x201b   :  { %1291 = vrot.lane.b32.xlu1 %v1750_v40, %s2116_s3 }
0x208d   :  { %v1292_v41 = vpop.permute.xlu1 %1291 }
0x208e   :  { %v1294_v42 = vmul.f32 %v2092_v38, %v1292_v41 }
0x2090   :  { %1296 = vrot.lane.b32.xlu0 %v1294_v42, %s2117_s30 }
0x2102   :  { %v1297_v43 = vpop.permute.xlu0 %1296 }
0x2103   :  { %v1299_v45 = vadd.f32 %v1297_v43, %v1289_v21 }
0x2105   :  { %2093 = vtanh.f32 %v1299_v45 }
0x210f   :  { %v2094_v46 = vpop.eup %2093 }
0x2110   :  { %1302 = vrot.lane.b32.xlu1 %v2094_v46, %s2116_s3 }
0x2182   :  { %v1303_v47 = vpop.permute.xlu1 %1302 }
0x2183   :  { %v2509_v48 = vmul.f32 %v2092_v38, %v1303_v47  ;;  %v909_v38 = vadd.f32 %v2467_v35, %v2402_v26 }
0x2185   :  { %v1311_v49 = vpack.c.bf16 %v2509_v48, %v2509_v48 }
0x2187   :  { %1313 = vrot.lane.b32.xlu0 %v1311_v49, %s2117_s30 }
0x21f9   :  { %v1314_v50 = vpop.permute.xlu0 %1313 }
0x21fa   :  { %1965 = vmatmul.mubr.msk.bf16.vlgmr.msra.gmra.mrb[36].mxu1 %vm173_vm2, %v1314_v50 }
0x21fb   :  { %1977 = vmatpush3.bf16.msra.mxu1 %v2366_v9  ;;  %1980 = vmatprep.mubr.msk.bf16.mxu1 %vm2114_vm1, %v2113_v4 }
0x21fc   :  { %1978 = vmatprep.subr.bf16.mxu1 %v2113_v4 }
0x21ff   :  { %1979 = vmatpush3.bf16.msra.mxu1 %v2374_v10 }
0x22cd   :  { %v1352_v53 = vpop.f32.mrb[36].mxu1 }
0x22ce   :  { %v1358_v12 = vadd.f32 %v1352_v53, %v901_v51  ;;  %v1966_v11 = vpop.f32.mrb[37].mxu1 }
0x22cf   :  { %v1355_v54 = vpop.f32.mrb[38].mxu1 }
0x22d0   :  { %v1752_v56 = vmul.f32 -1.442695, %v1358_v12  ;;  %v1967_v58 = vpop.f32.mrb[39].mxu1 }
0x22d2   :  { %2095 = vpow2.f32 %v1752_v56 }
0x22dc   :  { %v2096_v44 = vpop.eup %2095 }
0x22dd   :  { %v1362_v31 = vadd.f32 1.0, %v2096_v44 }
0x22df   :  { %2097 = vrcp.f32 %v1362_v31 }
0x22e9   :  { %v2098_v9 = vpop.eup %2097 }
0x22ea   :  { %v1365_v59 = vmul.f32 2.0, %v2098_v9  ;;  %v1367_v36 = vmul.f32 %v2098_v9, %v1299_v45 }
0x22ec   :  { %v1753_v61 = vadd.f32 -1.0, %v1365_v59 }
0x22ee   :  { %1369 = vrot.lane.b32.xlu1 %v1753_v61, %s2116_s3 }
0x2360   :  { %v1370_v4 = vpop.permute.xlu1 %1369 }
0x2361   :  { %v1372_v10 = vmul.f32 %v2098_v9, %v1370_v4 }
0x2363   :  { %1374 = vrot.lane.b32.xlu0 %v1372_v10, %s2117_s30 }
0x23d5   :  { %v1375_v62 = vpop.permute.xlu0 %1374 }
0x23d6   :  { %v1377_v63 = vadd.f32 %v1375_v62, %v1367_v36 }
0x23d8   :  { %2099 = vtanh.f32 %v1377_v63 }
0x23e2   :  { %v2100_v0 = vpop.eup %2099 }
0x23e3   :  { %1380 = vrot.lane.b32.xlu1 %v2100_v0, %s2116_s3 }
0x2455   :  { %v1381_v2 = vpop.permute.xlu1 %1380 }
0x2456   :  { %v2525_v1 = vmul.f32 %v2098_v9, %v1381_v2 }
0x2458   :  { %v1389_v15 = vpack.c.bf16 %v2525_v1, %v2525_v1 }
0x245a   :  { %1391 = vrot.lane.b32.xlu0 %v1389_v15, %s2117_s30 }
0x24cc   :  { %v1392_v52 = vpop.permute.xlu0 %1391 }
0x24cd   :  { %1973 = vmatmul.mubr.msk.bf16.vlgmr.msra.gmra.mrb[32].mxu0 %vm173_vm2, %v1392_v52 }
0x25a0   :  { %v1430_v5 = vpop.f32.mrb[32].mxu0 }
0x25a1   :  { %v1436_v6 = vadd.f32 %v1430_v5, %v906_v60  ;;  %v1974_v14 = vpop.f32.mrb[33].mxu0 }
0x25a2   :  { %v1433_v13 = vpop.f32.mrb[34].mxu0 }
0x25a3   :  { %v1755_v17 = vmul.f32 -1.442695, %v1436_v6  ;;  %v1975_v19 = vpop.f32.mrb[35].mxu0 }
0x25a5   :  { %2101 = vpow2.f32 %v1755_v17 }
0x25af   :  { %v2102_v20 = vpop.eup %2101 }
0x25b0   :  { %v1440_v8 = vadd.f32 1.0, %v2102_v20 }
0x25b2   :  { %2103 = vrcp.f32 %v1440_v8 }
0x25bc   :  { %v2104_v23 = vpop.eup %2103 }
0x25bd   :  { %v1443_v25 = vmul.f32 2.0, %v2104_v23  ;;  %v1445_v34 = vmul.f32 %v2104_v23, %v1377_v63 }
0x25bf   :  { %v1756_v28 = vadd.f32 -1.0, %v1443_v25  ;;  %v1762_v25 = vld [vmem:[%s2627_s8] ss:$0 sm:$0xff] }
0x25c1   :  { %1447 = vrot.lane.b32.xlu1 %v1756_v28, %s2116_s3 }
0x2633   :  { %v1448_v16 = vpop.permute.xlu1 %1447 }
0x2634   :  { %v1450_v3 = vmul.f32 %v2104_v23, %v1448_v16 }
0x2636   :  { %1452 = vrot.lane.b32.xlu0 %v1450_v3, %s2117_s30 }
0x26a8   :  { %v1453_v37 = vpop.permute.xlu0 %1452 }
0x26a9   :  { %v1455_v29 = vadd.f32 %v1453_v37, %v1445_v34 }
0x26ab   :  { %2105 = vtanh.f32 %v1455_v29 }
0x26b5   :  { %v2106_v30 = vpop.eup %2105 }
0x26b6   :  { %1458 = vrot.lane.b32.xlu1 %v2106_v30, %s2116_s3 }
0x2728   :  { %v1459_v32 = vpop.permute.xlu1 %1458 }
0x2729   :  { %v1461_v7 = vmul.f32 %v2104_v23, %v1459_v32 }
0x272b   :  { %v1467_v33 = vpack.c.bf16 %v1461_v7, %v1461_v7 }
0x272d   :  { %1469 = vrot.lane.b32.xlu0 %v1467_v33, %s2117_s30 }
0x279f   :  { %v1470_v18 = vpop.permute.xlu0 %1469 }
0x27a0   :  { %1981 = vmatmul.mubr.msk.bf16.vlgmr.msra.gmra.mrb[40].mxu1 %vm173_vm2, %v1470_v18 }
0x2873   :  { %v1508_v39 = vpop.f32.mrb[40].mxu1 }
0x2874   :  { %v1514_v40 = vadd.f32 %v1508_v39, %v909_v38  ;;  %v1982_v41 = vpop.f32.mrb[41].mxu1 }
0x2875   :  { %v1511_v42 = vpop.f32.mrb[42].mxu1 }
0x2876   :  { %v1758_v21 = vmul.f32 -1.442695, %v1514_v40  ;;  %v1983_v43 = vpop.f32.mrb[43].mxu1 }
0x2878   :  { %2107 = vpow2.f32 %v1758_v21 }
0x2882   :  { %v2108_v45 = vpop.eup %2107 }
0x2883   :  { %v1518_v46 = vadd.f32 1.0, %v2108_v45 }
0x2885   :  { %2109 = vrcp.f32 %v1518_v46 }
0x288f   :  { %v2110_v47 = vpop.eup %2109 }
0x2890   :  { %v1521_v49 = vmul.f32 2.0, %v2110_v47  ;;  %v1523_v26 = vmul.f32 %v2110_v47, %v1455_v29 }
0x2892   :  { %v1759_v50 = vadd.f32 -1.0, %v1521_v49 }
0x2894   :  { %1525 = vrot.lane.b32.xlu1 %v1759_v50, %s2116_s3 }
0x2906   :  { %v1526_v51 = vpop.permute.xlu1 %1525 }
0x2907   :  { %v1528_v53 = vmul.f32 %v2110_v47, %v1526_v51 }
0x2909   :  { %1530 = vrot.lane.b32.xlu0 %v1528_v53, %s2117_s30 }
0x290d   :  { %995 = vrot.lane.b32.xlu0 %v2409_v22, %s2117_s30 }
0x2911   :  { %1151 = vrot.lane.b32.xlu0 %v2476_v55, %s2117_s30  ;;  %v2015_v55 = vld [vmem:[%s2625_s7] sm:$0xff]  }
0x2912   :  { %1984 = vmatprep.subr.bf16.mxu0 %v2015_v55 }
0x2913   :  { %1985 = vmatpush3.bf16.msra.mxu0 %v2015_v55 }
0x2915   :  { %1307 = vrot.lane.b32.xlu0 %v2509_v48, %s2117_s30 }
0x2919   :  { %1463 = vrot.lane.b32.xlu0 %v1461_v7, %s2117_s30 }
0x291d   :  { %796 = vrot.lane.b32.xlu0 %v2420_v57, %s2118_s21  ;;  %v2016_v57 = vld [vmem:[%s2625_s7 + $0x8] sm:$0xff]  }
0x291e   :  { %1986 = vmatprep.subr.bf16.mxu0 %v2016_v57 }
0x291f   :  { %1987 = vmatpush3.bf16.msra.mxu0 %v2016_v57 }
0x297b   :  { %v1531_v35 = vpop.permute.xlu0 %1530 }
0x297c   :  { %v1533_v12 = vadd.f32 %v1531_v35, %v1523_v26 }
0x297e   :  { %2111 = vtanh.f32 %v1533_v12 }
0x297f   :  { %v996_v11 = vpop.permute.xlu0 %995 }
0x2980   :  { %998 = vst.msk [vmem:[#allocation2] sm:$0xff] %vm173_vm2, %v996_v11 }
0x2983   :  { %v1152_v22 = vpop.permute.xlu0 %1151 }
0x2984   :  { %1154 = vst.msk [vmem:[#allocation2 + $0x10] sm:$0xff] %vm173_vm2, %v1152_v22 }
0x2987   :  { %v1308_v48 = vpop.permute.xlu0 %1307  ;;  %v1553_v59 = vld [vmem:[#allocation2] sm:$0xff] }
0x2988   :  { %v2112_v54 = vpop.eup %2111  ;;  %1310 = vst.msk [vmem:[#allocation2 + $0x20] sm:$0xff] %vm173_vm2, %v1308_v48 }
0x2989   :  { %1536 = vrot.lane.b32.xlu1 %v2112_v54, %s2116_s3 }
0x298b   :  { %v1464_v56 = vpop.permute.xlu0 %1463  ;;  %v1555_v36 = vld [vmem:[#allocation2 + $0x10] sm:$0xff] }
0x298c   :  { %1466 = vst.msk [vmem:[#allocation2 + $0x30] sm:$0xff] %vm173_vm2, %v1464_v56  ;;  %v1563_v0 = vmax.f32 %v1555_v36, 0.0 }
0x298d   :  { %1073 = vrot.lane.b32.xlu1 %v2441_v27, %s2117_s30 }
0x298f   :  { %v797_v58 = vpop.permute.xlu0 %796 }
0x2990   :  { %799 = vst.msk [vmem:[%s2626_s11] sm:$0xff] %vm173_vm2, %v797_v58 }
0x2991   :  { %1229 = vrot.lane.b32.xlu1 %v2493_v24, %s2117_s30  ;;  %v1561_v24 = vmax.f32 %v1553_v59, 0.0 }
0x2993   :  { %v1559_v17 = vld [vmem:[#allocation2 + $0x30] sm:$0xff] }
0x2994   :  { %v1567_v20 = vmax.f32 %v1559_v17, 0.0 }
0x2995   :  { %1385 = vrot.lane.b32.xlu1 %v2525_v1, %s2117_s30  ;;  %v1557_v1 = vld [vmem:[#allocation2 + $0x20] sm:$0xff] }
0x2996   :  { %v1565_v60 = vmax.f32 %v1557_v1, 0.0 }
0x29fb   :  { %v1537_v44 = vpop.permute.xlu1 %1536 }
0x29fc   :  { %v1539_v31 = vmul.f32 %v2110_v47, %v1537_v44 }
0x29fe   :  { %1541 = vrot.lane.b32.xlu1 %v1539_v31, %s2117_s30 }
0x29ff   :  { %v1074_v9 = vpop.permute.xlu1 %1073 }
0x2a00   :  { %1076 = vst.msk [vmem:[#allocation2 + $0x8] sm:$0xff] %vm173_vm2, %v1074_v9 }
0x2a02   :  { %1548 = vrot.lane.b32.xlu1 %v1533_v12, %s2118_s21 }
0x2a03   :  { %v1230_v27 = vpop.permute.xlu1 %1229 }
0x2a04   :  { %1232 = vst.msk [vmem:[#allocation2 + $0x18] sm:$0xff] %vm173_vm2, %v1230_v27 }
0x2a07   :  { %v1386_v61 = vpop.permute.xlu1 %1385  ;;  %v1554_v4 = vld [vmem:[#allocation2 + $0x8] sm:$0xff] }
0x2a08   :  { %1388 = vst.msk [vmem:[#allocation2 + $0x28] sm:$0xff] %vm173_vm2, %v1386_v61  ;;  %v1562_v10 = vmax.f32 %v1554_v4, 0.0 }
0x2a0a   :  { %v1569_v62 = vpack.c.bf16 %v1562_v10, %v1561_v24 }
0x2a0b   :  { %v1556_v63 = vld [vmem:[#allocation2 + $0x18] sm:$0xff] }
0x2a0c   :  { %1988 = vmatprep.mubr.msk.bf16.mxu0 %vm173_vm2, %v1569_v62  ;;  %v1564_v2 = vmax.f32 %v1556_v63, 0.0 }
0x2a0e   :  { %v1570_v15 = vpack.c.bf16 %v1564_v2, %v1563_v0 }
0x2a0f   :  { %v1558_v52 = vld [vmem:[#allocation2 + $0x28] sm:$0xff] }
0x2a10   :  { %1989 = vmatmul.mubr.msk.bf16.vlgmr.msra.gmra.mrb[36].mxu0 %vm173_vm2, %v1570_v15  ;;  %v1566_v5 = vmax.f32 %v1558_v52, 0.0 }
0x2a12   :  { %v1571_v6 = vpack.c.bf16 %v1566_v5, %v1565_v60 }
0x2a14   :  { %1992 = vmatprep.mubr.msk.bf16.mxu0 %vm173_vm2, %v1571_v6 }
0x2a70   :  { %v1542_v14 = vpop.permute.xlu1 %1541 }
0x2a71   :  { %1544 = vst.msk [vmem:[#allocation2 + $0x38] sm:$0xff] %vm173_vm2, %v1542_v14  ;;  %1760 = vst.msk [vmem:[%s2624_s10 + $0x8] sm:$0xff] %vm173_vm2, %v1542_v14 }
0x2a74   :  { %v1549_v13 = vpop.permute.xlu1 %1548 }
0x2a75   :  { %1761 = vst.msk [vmem:[%s2626_s11 + $0x8] sm:$0xff] %vm173_vm2, %v1549_v13 }
0x2a78   :  { %v1560_v19 = vld [vmem:[#allocation2 + $0x38] sm:$0xff] }
0x2a79   :  { %v1568_v8 = vmax.f32 %v1560_v19, 0.0 }
0x2a7b   :  { %v1572_v23 = vpack.c.bf16 %v1568_v8, %v1567_v20 }
0x2a7d   :  { %1993 = vmatmul.mubr.msk.bf16.gmra.mrb[40].mxu0 %vm173_vm2, %v1572_v23 }
0x2ae3   :  { %v1990_v28 = vpop.f32.mrb[36].mxu0 }
0x2ae4   :  { %v1651_v16 = vadd.f32 %v1990_v28, %v1762_v25  ;;  %v1642_v3 = vpop.f32.mrb[37].mxu0 }
0x2ae5   :  { %v1643_v34 = vadd.f32 %v1762_v25, %v1642_v3  ;;  %v1991_v37 = vpop.f32.mrb[38].mxu0 }
0x2ae6   :  { %1675 = vst [vmem:[%s2628_s9 + $0x10] sm:$0xff] %v1651_v16  ;;  %v1654_v29 = vadd.f32 %v1991_v37, %v1762_v25  ;;  %v1645_v30 = vpop.f32.mrb[39].mxu0 }
0x2ae7   :  { %1673 = vst [vmem:[%s2628_s9] sm:$0xff] %v1643_v34  ;;  %v1646_v32 = vadd.f32 %v1762_v25, %v1645_v30 }
0x2ae8   :  { %1676 = vst [vmem:[%s2628_s9 + $0x18] sm:$0xff] %v1654_v29 }
0x2ae9   :  { %1674 = vst [vmem:[%s2628_s9 + $0x8] sm:$0xff] %v1646_v32 }
0x2b50   :  { %v1994_v7 = vpop.f32.mrb[40].mxu0 }
0x2b51   :  { %v1667_v33 = vadd.f32 %v1994_v7, %v1762_v25  ;;  %v1658_v18 = vpop.f32.mrb[41].mxu0 }
0x2b52   :  { %v1659_v38 = vadd.f32 %v1762_v25, %v1658_v18  ;;  %v1995_v39 = vpop.f32.mrb[42].mxu0 }
0x2b53   :  { %1679 = vst [vmem:[%s2628_s9 + $0x30] sm:$0xff] %v1667_v33  ;;  %v1670_v40 = vadd.f32 %v1995_v39, %v1762_v25  ;;  %v1661_v41 = vpop.f32.mrb[43].mxu0 }
0x2b54   :  { %1677 = vst [vmem:[%s2628_s9 + $0x20] sm:$0xff] %v1659_v38  ;;  %v1662_v42 = vadd.f32 %v1762_v25, %v1661_v41 }
0x2b55   :  { %1680 = vst [vmem:[%s2628_s9 + $0x38] sm:$0xff] %v1670_v40 }
0x2b56   :  { %1678 = vst [vmem:[%s2628_s9 + $0x28] sm:$0xff] %v1662_v42 }

</bundles_post_ra>
